<compile_context>
chip_gen: v6e
topology: v6e:2x2x1
jax: 0.10.0
libtpu: 0.0.40
codegen_flags: <defaults>
</compile_context>

<pallas_src>
import functools

import jax
import jax.numpy as jnp
from jax import lax
from jax.experimental import pallas as pl
from jax.experimental.pallas import tpu as pltpu


# ------------------------- in-kernel helpers -------------------------

def _gelu_erf(x):
    """Exact-erf GELU (matches torch.nn.GELU() default).

    Abramowitz & Stegun 7.1.26 rational approximation of erf (|err| <= 1.5e-7
    with an exact reciprocal).  The divide is routed to the EUP via
    pl.reciprocal(approx=True) so it stays off the binding VALU slot (adds
    only ~1e-4-level error); exp() also runs on the EUP.
    """
    a1, a2, a3, a4, a5 = (0.254829592, -0.284496736, 1.421413741,
                          -1.453152027, 1.061405429)
    p = 0.3275911
    z = x * 0.7071067811865476          # x / sqrt(2)
    az = jnp.abs(z)
    t = pl.reciprocal(1.0 + p * az, approx=True)
    poly = ((((a5 * t + a4) * t + a3) * t + a2) * t + a1) * t
    erf_az = 1.0 - poly * jnp.exp(-az * az)
    erf_z = jnp.where(z < 0.0, -erf_az, erf_az)
    return 0.5 * x * (1.0 + erf_z)


# ------------------------- Pallas kernel -------------------------

def _ffn_kernel(x_ref, g_ref, bta_ref, w1t_ref, b1_ref, w2t_ref, b2_ref,
                o_ref, *, eps):
    """Fused LayerNorm -> Linear -> GELU -> Linear -> +residual (one token tile).

    Natural row-major layout: tokens on sublanes, features on lanes.
      x_ref   : (TM, D)  input tile (pre-LN; also the residual)
      g_ref   : (1, D)   LN gamma        bta_ref : (1, D)  LN beta
      w1t_ref : (D, H)   Linear1 weight (pre-transposed)   b1_ref : (1, H)
      w2t_ref : (H, D)   Linear2 weight (pre-transposed)   b2_ref : (1, D)
      o_ref   : (TM, D)  output tile
    """
    x = x_ref[...].astype(jnp.float32)                        # (TM, D)

    # LayerNorm over the feature (lane) axis, f32.
    mean = jnp.mean(x, axis=-1, keepdims=True)                # (TM, 1)
    xc = x - mean
    var = jnp.mean(xc * xc, axis=-1, keepdims=True)
    xn = xc * lax.rsqrt(var + eps) * g_ref[...] + bta_ref[...]

    # Linear 1 + GELU   (MXU: (TM, D) @ (D, H) -> (TM, H), lane-dense).
    # Matmuls stay f32; bf16 weights are up-cast here (tiny) instead of
    # down-casting the large activations on the binding VALU slot.
    h = jnp.dot(xn, w1t_ref[...].astype(jnp.float32),
                preferred_element_type=jnp.float32) + b1_ref[...]
    h = _gelu_erf(h)

    # Linear 2 + residual  (MXU: (TM, H) @ (H, D) -> (TM, D)).
    out = jnp.dot(h, w2t_ref[...].astype(jnp.float32),
                  preferred_element_type=jnp.float32) + b2_ref[...]

    # TODO(synk): dropout / StochasticDepth with p > 0 would need a
    # pltpu.prng_seed/prng_random_bits mask here; module defaults (p=0) are identity.
    o_ref[...] = (out + x).astype(o_ref.dtype)


# ------------------------- wrapper -------------------------

def _round_up(n, m):
    return ((n + m - 1) // m) * m


_TM_CANDIDATES = (4096, 2048, 1024, 512, 384, 256, 128)


def _pick_tm(mp):
    """Token (sublane) tile size.  mp is a multiple of 128.

    Prefer big tiles (amortize ~0.35us fixed per-grid-step overhead), but keep
    >=4 grid steps when possible (2 v7x TensorCores x 2 steps each so the DMA
    double-buffer overlaps), relaxing to >=2 and then 1 for small problems.
    """
    for min_steps in (4, 2, 1):
        for tm in _TM_CANDIDATES:
            if mp % tm == 0 and mp // tm >= min_steps:
                return tm
    return mp


@functools.partial(jax.jit, static_argnames=("eps",))
def feed_forward(x, gamma, beta, w1, b1, w2, b2, eps=1e-5):
    """x: (B, S, D).  torch Linear layout: w1 (H, D), b1 (H,), w2 (D, H), b2 (D,)."""
    assert eps > 0.0, "eps must be > 0 (padded zero rows rely on it)"
    B, S, D = x.shape
    H = w1.shape[0]
    M = B * S

    Mp = _round_up(M, 128)
    TM = _pick_tm(Mp)

    x2 = x.reshape(M, D)
    if Mp != M:
        # Zero rows stay finite through LN because eps > 0; sliced off below.
        x2 = jnp.pad(x2, ((0, Mp - M), (0, 0)))

    kernel = functools.partial(_ffn_kernel, eps=eps)

    out = pl.pallas_call(
        kernel,
        out_shape=jax.ShapeDtypeStruct((Mp, D), x.dtype),
        grid=(Mp // TM,),
        in_specs=[
            pl.BlockSpec((TM, D), lambda i: (i, 0)),   # x tile (streamed)
            pl.BlockSpec((1, D), lambda i: (0, 0)),    # gamma (constant idx -> fetched once)
            pl.BlockSpec((1, D), lambda i: (0, 0)),    # beta
            pl.BlockSpec((D, H), lambda i: (0, 0)),    # W1^T (resident)
            pl.BlockSpec((1, H), lambda i: (0, 0)),    # b1
            pl.BlockSpec((H, D), lambda i: (0, 0)),    # W2^T (resident)
            pl.BlockSpec((1, D), lambda i: (0, 0)),    # b2
        ],
        out_specs=pl.BlockSpec((TM, D), lambda i: (i, 0)),
        compiler_params=pltpu.CompilerParams(
            dimension_semantics=("parallel",),
            vmem_limit_bytes=32 * 1024 * 1024),
    )(x2, gamma.reshape(1, D), beta.reshape(1, D),
      # Weight transposes are 16 KiB one-offs (negligible); the removed
      # O(M*D) activation transposes were the expensive ones.
      w1.T, b1.reshape(1, H), w2.T, b2.reshape(1, D))

    return out[:M].reshape(B, S, D)


# ------------------------- reference (pure JAX) -------------------------

def reference_forward(x, gamma, beta, w1, b1, w2, b2, eps=1e-5):
    mean = jnp.mean(x, axis=-1, keepdims=True)
    var = jnp.mean((x - mean) ** 2, axis=-1, keepdims=True)
    xn = (x - mean) * lax.rsqrt(var + eps) * gamma + beta
    h = jax.nn.gelu(xn @ w1.T + b1, approximate=False)   # torch.nn.GELU() = exact erf
    out = h @ w2.T + b2
    return out + x                                        # dropout / layer_drop p=0 -> identity


# ------------------------- main -------------------------

if __name__ == "__main__":
    # Feed_Forward(emb_dim=32, dim_expan=4, dropout=0, layer_drop=0)
    emb_dim = 32
    dim_expan = 4
    hidden = dim_expan * emb_dim                          # 128
    B, S = 2, 128                                         # 256 tokens -> 2 grid steps

    key = jax.random.PRNGKey(0)
    ks = jax.random.split(key, 8)
    bound1 = float(1.0 / (emb_dim ** 0.5))
    bound2 = float(1.0 / (hidden ** 0.5))
    w1 = jax.random.uniform(ks[0], (hidden, emb_dim), jnp.float32, -bound1, bound1)
    b1 = jax.random.uniform(ks[1], (hidden,), jnp.float32, -bound1, bound1)
    w2 = jax.random.uniform(ks[2], (emb_dim, hidden), jnp.float32, -bound2, bound2)
    b2 = jax.random.uniform(ks[3], (emb_dim,), jnp.float32, -bound2, bound2)
    gamma = 1.0 + 0.1 * jax.random.normal(ks[4], (emb_dim,), jnp.float32)
    beta = 0.1 * jax.random.normal(ks[5], (emb_dim,), jnp.float32)
    x = jax.random.normal(ks[6], (B, S, emb_dim), jnp.float32)

    out = feed_forward(x, gamma, beta, w1, b1, w2, b2)
    out = jax.block_until_ready(out)

    ref = reference_forward(x, gamma, beta, w1, b1, w2, b2)
    assert out.shape == ref.shape == (B, S, emb_dim), (out.shape, ref.shape)
    max_err = float(jnp.max(jnp.abs(out - ref)))
    assert jnp.allclose(out, ref, atol=3e-3, rtol=3e-3), max_err

    # bf16-weight path (weights arrive bf16; up-cast in-kernel, math stays f32).
    out_bf16 = feed_forward(x, gamma, beta,
                            w1.astype(jnp.bfloat16), b1,
                            w2.astype(jnp.bfloat16), b2)
    out_bf16 = jax.block_until_ready(out_bf16)
    assert jnp.allclose(out_bf16, ref, atol=5e-2, rtol=5e-2), float(
        jnp.max(jnp.abs(out_bf16 - ref)))

    print("KERNEL_OK")
</pallas_src>

<mosaic_0001>
module attributes {stable_mosaic.version = 11 : i64} {
  func.func @_ffn_kernel(%arg0: i32, %arg1: memref<128x32xf32, #tpu.memory_space<vmem>>, %arg2: memref<1x32xf32, #tpu.memory_space<vmem>>, %arg3: memref<1x32xf32, #tpu.memory_space<vmem>>, %arg4: memref<32x128xf32, #tpu.memory_space<vmem>>, %arg5: memref<1x128xf32, #tpu.memory_space<vmem>>, %arg6: memref<128x32xf32, #tpu.memory_space<vmem>>, %arg7: memref<1x32xf32, #tpu.memory_space<vmem>>, %arg8: memref<128x32xf32, #tpu.memory_space<vmem>>) attributes {dimension_semantics = [#tpu.dimension_semantics<parallel>], iteration_bounds = array<i64: 2>, scalar_prefetch = 0 : i64, scratch_operands = 0 : i64, tpu.core_type = #tpu.core_type<tc>, window_params = [{transform_indices = @transform_0, window_bounds = array<i64: 128, 32>}, {pipeline_mode = #tpu.pipeline_mode<synchronous>, transform_indices = @transform_1, window_bounds = array<i64: 1, 32>}, {pipeline_mode = #tpu.pipeline_mode<synchronous>, transform_indices = @transform_2, window_bounds = array<i64: 1, 32>}, {pipeline_mode = #tpu.pipeline_mode<synchronous>, transform_indices = @transform_3, window_bounds = array<i64: 32, 128>}, {pipeline_mode = #tpu.pipeline_mode<synchronous>, transform_indices = @transform_4, window_bounds = array<i64: 1, 128>}, {pipeline_mode = #tpu.pipeline_mode<synchronous>, transform_indices = @transform_5, window_bounds = array<i64: 128, 32>}, {pipeline_mode = #tpu.pipeline_mode<synchronous>, transform_indices = @transform_6, window_bounds = array<i64: 1, 32>}, {transform_indices = @transform_7, window_bounds = array<i64: 128, 32>}]} {
    %c0 = arith.constant 0 : index
    %c0_0 = arith.constant 0 : index
    %0 = vector.load %arg1[%c0, %c0_0] : memref<128x32xf32, #tpu.memory_space<vmem>>, vector<128x32xf32>
    %cst = arith.constant dense<0.000000e+00> : vector<128xf32>
    %1 = vector.multi_reduction <add>, %0, %cst [1] : vector<128x32xf32> to vector<128xf32>
    %2 = vector.shape_cast %1 : vector<128xf32> to vector<128x1xf32>
    %cst_1 = arith.constant 3.200000e+01 : f32
    %3 = vector.broadcast %cst_1 : f32 to vector<128x1xf32>
    %4 = arith.divf %2, %3 : vector<128x1xf32>
    %5 = vector.broadcast %4 : vector<128x1xf32> to vector<128x32xf32>
    %6 = arith.subf %0, %5 : vector<128x32xf32>
    %7 = arith.mulf %6, %6 : vector<128x32xf32>
    %cst_2 = arith.constant dense<0.000000e+00> : vector<128xf32>
    %8 = vector.multi_reduction <add>, %7, %cst_2 [1] : vector<128x32xf32> to vector<128xf32>
    %9 = vector.shape_cast %8 : vector<128xf32> to vector<128x1xf32>
    %cst_3 = arith.constant 3.200000e+01 : f32
    %10 = vector.broadcast %cst_3 : f32 to vector<128x1xf32>
    %11 = arith.divf %9, %10 : vector<128x1xf32>
    %cst_4 = arith.constant 9.99999974E-6 : f32
    %12 = vector.broadcast %cst_4 : f32 to vector<128x1xf32>
    %13 = arith.addf %11, %12 : vector<128x1xf32>
    %14 = math.rsqrt %13 : vector<128x1xf32>
    %15 = vector.broadcast %14 : vector<128x1xf32> to vector<128x32xf32>
    %16 = arith.mulf %6, %15 : vector<128x32xf32>
    %c0_5 = arith.constant 0 : index
    %c0_6 = arith.constant 0 : index
    %17 = vector.load %arg2[%c0_5, %c0_6] : memref<1x32xf32, #tpu.memory_space<vmem>>, vector<1x32xf32>
    %18 = vector.broadcast %17 : vector<1x32xf32> to vector<128x32xf32>
    %19 = arith.mulf %16, %18 : vector<128x32xf32>
    %c0_7 = arith.constant 0 : index
    %c0_8 = arith.constant 0 : index
    %20 = vector.load %arg3[%c0_7, %c0_8] : memref<1x32xf32, #tpu.memory_space<vmem>>, vector<1x32xf32>
    %21 = vector.broadcast %20 : vector<1x32xf32> to vector<128x32xf32>
    %22 = arith.addf %19, %21 : vector<128x32xf32>
    %c0_9 = arith.constant 0 : index
    %c0_10 = arith.constant 0 : index
    %23 = vector.load %arg4[%c0_9, %c0_10] : memref<32x128xf32, #tpu.memory_space<vmem>>, vector<32x128xf32>
    %cst_11 = arith.constant dense<0.000000e+00> : vector<128x128xf32>
    %24 = tpu.matmul %22, %23, %cst_11 {dimension_numbers = #tpu.dot_dimension_numbers<[1], [0], [0], [1], [0, 0, 1, 1], [], []>} : vector<128x32xf32>, vector<32x128xf32>, vector<128x128xf32> -> vector<128x128xf32>
    %c0_12 = arith.constant 0 : index
    %c0_13 = arith.constant 0 : index
    %25 = vector.load %arg5[%c0_12, %c0_13] : memref<1x128xf32, #tpu.memory_space<vmem>>, vector<1x128xf32>
    %26 = vector.broadcast %25 : vector<1x128xf32> to vector<128x128xf32>
    %27 = arith.addf %24, %26 : vector<128x128xf32>
    %cst_14 = arith.constant 0.707106769 : f32
    %28 = vector.broadcast %cst_14 : f32 to vector<128x128xf32>
    %29 = arith.mulf %27, %28 : vector<128x128xf32>
    %30 = math.absf %29 : vector<128x128xf32>
    %cst_15 = arith.constant 0.327591091 : f32
    %31 = vector.broadcast %cst_15 : f32 to vector<128x128xf32>
    %32 = arith.mulf %31, %30 : vector<128x128xf32>
    %cst_16 = arith.constant 1.000000e+00 : f32
    %33 = vector.broadcast %cst_16 : f32 to vector<128x128xf32>
    %34 = arith.addf %33, %32 : vector<128x128xf32>
    %35 = tpu.reciprocal %34 {approx = true} : vector<128x128xf32> -> vector<128x128xf32>
    %cst_17 = arith.constant 1.06140542 : f32
    %36 = vector.broadcast %cst_17 : f32 to vector<128x128xf32>
    %37 = arith.mulf %36, %35 : vector<128x128xf32>
    %cst_18 = arith.constant -1.45315206 : f32
    %38 = vector.broadcast %cst_18 : f32 to vector<128x128xf32>
    %39 = arith.addf %37, %38 : vector<128x128xf32>
    %40 = arith.mulf %39, %35 : vector<128x128xf32>
    %cst_19 = arith.constant 1.42141378 : f32
    %41 = vector.broadcast %cst_19 : f32 to vector<128x128xf32>
    %42 = arith.addf %40, %41 : vector<128x128xf32>
    %43 = arith.mulf %42, %35 : vector<128x128xf32>
    %cst_20 = arith.constant -0.284496725 : f32
    %44 = vector.broadcast %cst_20 : f32 to vector<128x128xf32>
    %45 = arith.addf %43, %44 : vector<128x128xf32>
    %46 = arith.mulf %45, %35 : vector<128x128xf32>
    %cst_21 = arith.constant 0.254829586 : f32
    %47 = vector.broadcast %cst_21 : f32 to vector<128x128xf32>
    %48 = arith.addf %46, %47 : vector<128x128xf32>
    %49 = arith.mulf %48, %35 : vector<128x128xf32>
    %cst_22 = arith.constant 0.000000e+00 : f32
    %50 = vector.broadcast %cst_22 : f32 to vector<128x128xf32>
    %51 = arith.subf %50, %30 : vector<128x128xf32>
    %52 = arith.mulf %51, %30 : vector<128x128xf32>
    %53 = math.exp %52 : vector<128x128xf32>
    %54 = arith.mulf %49, %53 : vector<128x128xf32>
    %cst_23 = arith.constant 1.000000e+00 : f32
    %55 = vector.broadcast %cst_23 : f32 to vector<128x128xf32>
    %56 = arith.subf %55, %54 : vector<128x128xf32>
    %cst_24 = arith.constant 0.000000e+00 : f32
    %57 = vector.broadcast %cst_24 : f32 to vector<128x128xf32>
    %58 = arith.cmpf olt, %29, %57 : vector<128x128xf32>
    %cst_25 = arith.constant 0.000000e+00 : f32
    %59 = vector.broadcast %cst_25 : f32 to vector<128x128xf32>
    %60 = arith.subf %59, %56 : vector<128x128xf32>
    %61 = arith.select %58, %60, %56 : vector<128x128xi1>, vector<128x128xf32>
    %cst_26 = arith.constant 5.000000e-01 : f32
    %62 = vector.broadcast %cst_26 : f32 to vector<128x128xf32>
    %63 = arith.mulf %62, %27 : vector<128x128xf32>
    %cst_27 = arith.constant 1.000000e+00 : f32
    %64 = vector.broadcast %cst_27 : f32 to vector<128x128xf32>
    %65 = arith.addf %64, %61 : vector<128x128xf32>
    %66 = arith.mulf %63, %65 : vector<128x128xf32>
    %c0_28 = arith.constant 0 : index
    %c0_29 = arith.constant 0 : index
    %67 = vector.load %arg6[%c0_28, %c0_29] : memref<128x32xf32, #tpu.memory_space<vmem>>, vector<128x32xf32>
    %cst_30 = arith.constant dense<0.000000e+00> : vector<128x32xf32>
    %68 = tpu.matmul %66, %67, %cst_30 {dimension_numbers = #tpu.dot_dimension_numbers<[1], [0], [0], [1], [0, 0, 1, 1], [], []>} : vector<128x128xf32>, vector<128x32xf32>, vector<128x32xf32> -> vector<128x32xf32>
    %c0_31 = arith.constant 0 : index
    %c0_32 = arith.constant 0 : index
    %69 = vector.load %arg7[%c0_31, %c0_32] : memref<1x32xf32, #tpu.memory_space<vmem>>, vector<1x32xf32>
    %70 = vector.broadcast %69 : vector<1x32xf32> to vector<128x32xf32>
    %71 = arith.addf %68, %70 : vector<128x32xf32>
    %72 = arith.addf %71, %0 : vector<128x32xf32>
    %c0_33 = arith.constant 0 : index
    %c0_34 = arith.constant 0 : index
    %73 = vector.load %arg8[%c0_33, %c0_34] : memref<128x32xf32, #tpu.memory_space<vmem>>, vector<128x32xf32>
    tpu.vector_store %arg8[%c0_33, %c0_34], %72 {strides = array<i32>} : memref<128x32xf32, #tpu.memory_space<vmem>>, vector<128x32xf32>,
    return
  }
  func.func @transform_0(%arg0: i32) -> (i32, i32) {
    %c0_i32 = arith.constant 0 : i32
    %c0_i32_0 = arith.constant 0 : i32
    return %arg0, %c0_i32 : i32, i32
  }
  func.func @transform_1(%arg0: i32) -> (i32, i32) {
    %c0_i32 = arith.constant 0 : i32
    %c0_i32_0 = arith.constant 0 : i32
    %c0_i32_1 = arith.constant 0 : i32
    return %c0_i32, %c0_i32_0 : i32, i32
  }
  func.func @transform_2(%arg0: i32) -> (i32, i32) {
    %c0_i32 = arith.constant 0 : i32
    %c0_i32_0 = arith.constant 0 : i32
    %c0_i32_1 = arith.constant 0 : i32
    return %c0_i32, %c0_i32_0 : i32, i32
  }
  func.func @transform_3(%arg0: i32) -> (i32, i32) {
    %c0_i32 = arith.constant 0 : i32
    %c0_i32_0 = arith.constant 0 : i32
    %c0_i32_1 = arith.constant 0 : i32
    return %c0_i32, %c0_i32_0 : i32, i32
  }
  func.func @transform_4(%arg0: i32) -> (i32, i32) {
    %c0_i32 = arith.constant 0 : i32
    %c0_i32_0 = arith.constant 0 : i32
    %c0_i32_1 = arith.constant 0 : i32
    return %c0_i32, %c0_i32_0 : i32, i32
  }
  func.func @transform_5(%arg0: i32) -> (i32, i32) {
    %c0_i32 = arith.constant 0 : i32
    %c0_i32_0 = arith.constant 0 : i32
    %c0_i32_1 = arith.constant 0 : i32
    return %c0_i32, %c0_i32_0 : i32, i32
  }
  func.func @transform_6(%arg0: i32) -> (i32, i32) {
    %c0_i32 = arith.constant 0 : i32
    %c0_i32_0 = arith.constant 0 : i32
    %c0_i32_1 = arith.constant 0 : i32
    return %c0_i32, %c0_i32_0 : i32, i32
  }
  func.func @transform_7(%arg0: i32) -> (i32, i32) {
    %c0_i32 = arith.constant 0 : i32
    %c0_i32_0 = arith.constant 0 : i32
    return %arg0, %c0_i32 : i32, i32
  }
}

</mosaic_0001>

<bundles_post_ra>
// kernel: feed_forward.1
= control target key start
LH: loop header
LB: loop body
LE: loop exit
PB: predicated region body
PF: predicated region fallthrough
CT: control target
= control target key end

     0   :  { %s1801_s24 = smov 0   ;;  %s2544_s0 = inlined_call_operand.vmem [shape: f32[256,32], index: 0, kind: input, shape index: {}]   ;;  %s2545_s1 = inlined_call_operand.vmem [shape: f32[1,32], index: 1, kind: input, shape index: {}]   ;;  %s2546_s2 = inlined_call_operand.vmem [shape: f32[1,32], index: 2, kind: input, shape index: {}]   ;;  %s2547_s3 = inlined_call_operand.vmem [shape: f32[32,128], index: 3, kind: input, shape index: {}]   ;;  %s2548_s4 = inlined_call_operand.vmem [shape: f32[1,128], index: 4, kind: input, shape index: {}]   ;;  %s2549_s5 = inlined_call_operand.vmem [shape: f32[128,32], index: 5, kind: input, shape index: {}]   ;;  %s2550_s6 = inlined_call_operand.vmem [shape: f32[1,32], index: 6, kind: input, shape index: {}]   ;;  %s2551_s7 = inlined_call_operand.vmem [shape: f32[256,32], index: 7, kind: output, shape index: {}]  }
   0x1 LB: > { %s1430_s25 = sadd.s32 4294967295, %s1759_s24   ;;  %p1434_p0 = scmp.ge.s32.totalorder %s1759_s24, 1  ;;  %s1759_s24 = sphi %s1801_s24, %s17_s24  }
   0x2   : > { %p238_p1 = scmp.lt.s32.totalorder %s1759_s24, 3 }
   0x4   : > { %p239_p2 = pnand %p1434_p0, %p238_p1 }
   0x6   : > { %242 = sbr.rel (%p239_p2) target bundleno = 842 (0x34a), region = 48 }
   0xb   : > { %s1435_s26 = sshll.u32 %s1430_s25, 4  ;;  %vm298_vm0 = vcmask 261120  }
   0xc   : > { %p271_p3 = scmp.lt.s32.totalorder %s1435_s26, 31 }
   0xe   : > { %s2593_s26 = smov (!%p271_p3, %s1435_s26), 31 }
   0xf   : > { %s1436_s27 = sshll.u32 %s2593_s26, 3 }
  0x10   : > { %s1817_s30 = scalar_lea.vmem %s2544_s0, %s1436_s27  ;;  %s2476_s20 = scalar_lea.vmem %s2551_s7, %s1436_s27 }
  0x11   : > { %v282_v0 = vld [vmem:[%s1817_s30] sm:$0xff]  ;;  %v284_v1 = vld [vmem:[%s1817_s30 + $0x10] sm:$0xff]  ;;  %v283_v2 = vld [vmem:[%s1817_s30 + $0x8] sm:$0xff] }
  0x12   : > { %v299_v3 = vsel %vm298_vm0, %v282_v0, 0.0  ;;  %v305_v4 = vsel %vm298_vm0, %v284_v1, 0.0  ;;  %v285_v5 = vld [vmem:[%s1817_s30 + $0x18] sm:$0xff]  ;;  %v302_v6 = vsel %vm298_vm0, %v283_v2, 0.0  ;;  %v286_v8 = vld [vmem:[%s1817_s30 + $0x20] sm:$0xff]  ;;  %v287_v9 = vld [vmem:[%s1817_s30 + $0x28] sm:$0xff] }
  0x13   : > { %300 = vadd.xlane.f32.xlu0 %v299_v3  ;;  %306 = vadd.xlane.f32.xlu1 %v305_v4  ;;  %v308_v7 = vsel %vm298_vm0, %v285_v5, 0.0  ;;  %v311_v10 = vsel %vm298_vm0, %v286_v8, 0.0  ;;  %v314_v11 = vsel %vm298_vm0, %v287_v9, 0.0  ;;  %v1832_v12 = vld [vmem:[%s1817_s30 + $0x30] sm:$0xff]  ;;  %v1835_v13 = vld [vmem:[%s1817_s30 + $0x38] sm:$0xff]  ;;  %v1842_v16 = vld [vmem:[%s1817_s30 + $0x40] sm:$0xff] }
  0x14   : > { %v317_v14 = vsel %vm298_vm0, %v1832_v12, 0.0  ;;  %v320_v15 = vsel %vm298_vm0, %v1835_v13, 0.0  ;;  %v1845_v17 = vld [vmem:[%s1817_s30 + $0x48] sm:$0xff]  ;;  %v323_v18 = vsel %vm298_vm0, %v1842_v16, 0.0  ;;  %v1852_v20 = vld [vmem:[%s1817_s30 + $0x50] sm:$0xff]  ;;  %v1855_v21 = vld [vmem:[%s1817_s30 + $0x58] sm:$0xff] }
  0x15   : > { %v326_v19 = vsel %vm298_vm0, %v1845_v17, 0.0  ;;  %v329_v22 = vsel %vm298_vm0, %v1852_v20, 0.0  ;;  %v332_v23 = vsel %vm298_vm0, %v1855_v21, 0.0  ;;  %v1862_v24 = vld [vmem:[%s1817_s30 + $0x60] sm:$0xff]  ;;  %v1865_v25 = vld [vmem:[%s1817_s30 + $0x68] sm:$0xff]  ;;  %v1872_v28 = vld [vmem:[%s1817_s30 + $0x70] sm:$0xff] }
  0x16   : > { %v335_v26 = vsel %vm298_vm0, %v1862_v24, 0.0  ;;  %v338_v27 = vsel %vm298_vm0, %v1865_v25, 0.0  ;;  %v1875_v29 = vld [vmem:[%s1817_s30 + $0x78] sm:$0xff]  ;;  %v341_v30 = vsel %vm298_vm0, %v1872_v28, 0.0 }
  0x17   : > { %303 = vadd.xlane.f32.xlu0 %v302_v6  ;;  %309 = vadd.xlane.f32.xlu1 %v308_v7  ;;  %v344_v31 = vsel %vm298_vm0, %v1875_v29, 0.0 }
  0x1b   : > { %312 = vadd.xlane.f32.xlu0 %v311_v10  ;;  %315 = vadd.xlane.f32.xlu1 %v314_v11 }
  0x1f   : > { %318 = vadd.xlane.f32.xlu0 %v317_v14  ;;  %321 = vadd.xlane.f32.xlu1 %v320_v15 }
  0x23   : > { %324 = vadd.xlane.f32.xlu0 %v323_v18  ;;  %327 = vadd.xlane.f32.xlu1 %v326_v19 }
  0x27   : > { %330 = vadd.xlane.f32.xlu0 %v329_v22  ;;  %333 = vadd.xlane.f32.xlu1 %v332_v23 }
  0x2b   : > { %336 = vadd.xlane.f32.xlu0 %v335_v26  ;;  %339 = vadd.xlane.f32.xlu1 %v338_v27 }
  0x2f   : > { %342 = vadd.xlane.f32.xlu0 %v341_v30  ;;  %345 = vadd.xlane.f32.xlu1 %v344_v31 }
  0x9c   : > { %v301_v32 = vpop.xlane.xlu0 %300  ;;  %v307_v33 = vpop.xlane.xlu1 %306 }
  0x9d   : > { %v348_v34 = vmul.f32 0.03125, %v301_v32  ;;  %v350_v35 = vmul.f32 0.03125, %v307_v33 }
  0x9f   : > { %v1881_v36 = vsub.f32 %v282_v0, %v348_v34  ;;  %v1883_v37 = vsub.f32 %v284_v1, %v350_v35 }
  0xa0   : > { %v304_v38 = vpop.xlane.xlu0 %303  ;;  %v310_v39 = vpop.xlane.xlu1 %309 }
  0xa1   : > { %v349_v40 = vmul.f32 0.03125, %v304_v38  ;;  %v351_v41 = vmul.f32 0.03125, %v310_v39  ;;  %v380_v42 = vmul.f32 %v1881_v36, %v1881_v36  ;;  %v382_v43 = vmul.f32 %v1883_v37, %v1883_v37 }
  0xa3   : > { %v1889_v44 = vsub.f32 %v283_v2, %v349_v40  ;;  %v1891_v45 = vsub.f32 %v285_v5, %v351_v41  ;;  %v396_v46 = vsel %vm298_vm0, %v380_v42, 0.0  ;;  %v402_v49 = vsel %vm298_vm0, %v382_v43, 0.0 }
  0xa4   : > { %397 = vadd.xlane.f32.xlu0 %v396_v46  ;;  %v313_v47 = vpop.xlane.xlu0 %312  ;;  %v316_v48 = vpop.xlane.xlu1 %315 }
  0xa5   : > { %v352_v50 = vmul.f32 0.03125, %v313_v47  ;;  %v353_v51 = vmul.f32 0.03125, %v316_v48  ;;  %v381_v52 = vmul.f32 %v1889_v44, %v1889_v44  ;;  %v383_v53 = vmul.f32 %v1891_v45, %v1891_v45 }
  0xa7   : > { %v1899_v54 = vsub.f32 %v286_v8, %v352_v50  ;;  %v1901_v55 = vsub.f32 %v287_v9, %v353_v51  ;;  %v399_v56 = vsel %vm298_vm0, %v381_v52, 0.0  ;;  %v405_v59 = vsel %vm298_vm0, %v383_v53, 0.0  ;;  %v556_v53 = vld [vmem:[%s2547_s3 + $0x10] sm:$0xff] }
  0xa8   : > { %403 = vadd.xlane.f32.xlu0 %v402_v49  ;;  %400 = vadd.xlane.f32.xlu1 %v399_v56  ;;  %v319_v57 = vpop.xlane.xlu0 %318  ;;  %v322_v58 = vpop.xlane.xlu1 %321  ;;  %v555_v56 = vld [vmem:[%s2547_s3 + $0x8] sm:$0xff] }
  0xa9   : > { %v354_v60 = vmul.f32 0.03125, %v319_v57  ;;  %v355_v61 = vmul.f32 0.03125, %v322_v58  ;;  %v384_v62 = vmul.f32 %v1899_v54, %v1899_v54  ;;  %v385_v63 = vmul.f32 %v1901_v55, %v1901_v55  ;;  %v554_v57 = vld [vmem:[%s2547_s3] sm:$0xff] }
  0xab   : > { %v1910_v0 = vsub.f32 %v1832_v12, %v354_v60  ;;  %v1913_v1 = vsub.f32 %v1835_v13, %v355_v61  ;;  %v408_v2 = vsel %vm298_vm0, %v384_v62, 0.0  ;;  %v411_v5 = vsel %vm298_vm0, %v385_v63, 0.0 }
  0xac   : > { %406 = vadd.xlane.f32.xlu1 %v405_v59  ;;  %409 = vadd.xlane.f32.xlu0 %v408_v2  ;;  %v325_v3 = vpop.xlane.xlu0 %324  ;;  %v328_v4 = vpop.xlane.xlu1 %327 }
  0xad   : > { %v356_v6 = vmul.f32 0.03125, %v325_v3  ;;  %v357_v7 = vmul.f32 0.03125, %v328_v4  ;;  %v386_v8 = vmul.f32 %v1910_v0, %v1910_v0  ;;  %v387_v9 = vmul.f32 %v1913_v1, %v1913_v1 }
  0xaf   : > { %v1922_v10 = vsub.f32 %v1842_v16, %v356_v6  ;;  %v1925_v11 = vsub.f32 %v1845_v17, %v357_v7  ;;  %v414_v12 = vsel %vm298_vm0, %v386_v8, 0.0  ;;  %v417_v15 = vsel %vm298_vm0, %v387_v9, 0.0 }
  0xb0   : > { %412 = vadd.xlane.f32.xlu1 %v411_v5  ;;  %415 = vadd.xlane.f32.xlu0 %v414_v12  ;;  %v331_v13 = vpop.xlane.xlu0 %330  ;;  %v334_v14 = vpop.xlane.xlu1 %333 }
  0xb1   : > { %v358_v18 = vmul.f32 0.03125, %v331_v13  ;;  %v359_v19 = vmul.f32 0.03125, %v334_v14  ;;  %v388_v22 = vmul.f32 %v1922_v10, %v1922_v10  ;;  %v389_v16 = vmul.f32 %v1925_v11, %v1925_v11 }
  0xb3   : > { %v1934_v23 = vsub.f32 %v1852_v20, %v358_v18  ;;  %v1937_v17 = vsub.f32 %v1855_v21, %v359_v19  ;;  %v420_v26 = vsel %vm298_vm0, %v388_v22, 0.0  ;;  %v423_v31 = vsel %vm298_vm0, %v389_v16, 0.0 }
  0xb4   : > { %418 = vadd.xlane.f32.xlu1 %v417_v15  ;;  %421 = vadd.xlane.f32.xlu0 %v420_v26  ;;  %v337_v27 = vpop.xlane.xlu0 %336  ;;  %v340_v30 = vpop.xlane.xlu1 %339 }
  0xb5   : > { %v360_v32 = vmul.f32 0.03125, %v337_v27  ;;  %v361_v33 = vmul.f32 0.03125, %v340_v30  ;;  %v390_v34 = vmul.f32 %v1934_v23, %v1934_v23  ;;  %v391_v20 = vmul.f32 %v1937_v17, %v1937_v17 }
  0xb7   : > { %v1946_v35 = vsub.f32 %v1862_v24, %v360_v32  ;;  %v1949_v21 = vsub.f32 %v1865_v25, %v361_v33  ;;  %v426_v38 = vsel %vm298_vm0, %v390_v34, 0.0  ;;  %v429_v41 = vsel %vm298_vm0, %v391_v20, 0.0  ;;  %v1986_v32 = vld [vmem:[%s2545_s1] ss:$0 sm:$0xff] }
  0xb8   : > { %424 = vadd.xlane.f32.xlu1 %v423_v31  ;;  %427 = vadd.xlane.f32.xlu0 %v426_v38  ;;  %v343_v39 = vpop.xlane.xlu0 %342  ;;  %v346_v40 = vpop.xlane.xlu1 %345 }
  0xb9   : > { %v362_v42 = vmul.f32 0.03125, %v343_v39  ;;  %v363_v43 = vmul.f32 0.03125, %v346_v40  ;;  %v392_v46 = vmul.f32 %v1946_v35, %v1946_v35  ;;  %v393_v24 = vmul.f32 %v1949_v21, %v1949_v21  ;;  %v1992_v40 = vld [vmem:[%s2546_s2] ss:$0 sm:$0xff] }
  0xbb   : > { %v1958_v47 = vsub.f32 %v1872_v28, %v362_v42  ;;  %v1961_v25 = vsub.f32 %v1875_v29, %v363_v43  ;;  %v432_v48 = vsel %vm298_vm0, %v392_v46, 0.0  ;;  %v435_v49 = vsel %vm298_vm0, %v393_v24, 0.0  ;;  %v557_v29 = vld [vmem:[%s2547_s3 + $0x18] sm:$0xff] }
  0xbc   : > { %430 = vadd.xlane.f32.xlu1 %v429_v41  ;;  %433 = vadd.xlane.f32.xlu0 %v432_v48 }
  0xbd   : > { %v394_v50 = vmul.f32 %v1958_v47, %v1958_v47  ;;  %v395_v51 = vmul.f32 %v1961_v25, %v1961_v25  ;;  %1513 = vmatprep.subr.mxu0 %v557_v29 }
  0xbe   : > { %1514 = vmatpush3.msra.mxu0 %v557_v29 }
  0xbf   : > { %v438_v52 = vsel %vm298_vm0, %v394_v50, 0.0  ;;  %v441_v28 = vsel %vm298_vm0, %v395_v51, 0.0  ;;  %1515 = vmatprep.subr.mxu0 %v556_v53 }
  0xc0   : > { %436 = vadd.xlane.f32.xlu1 %v435_v49  ;;  %439 = vadd.xlane.f32.xlu0 %v438_v52 }
  0xc1   : > { %1516 = vmatpush3.msra.mxu0 %v556_v53 }
  0xc2   : > { %1517 = vmatprep.subr.mxu0 %v555_v56 }
  0xc3   : > { %1518 = vmatpush3.msra.mxu0 %v555_v56 }
  0xc4   : > { %442 = vadd.xlane.f32.xlu1 %v441_v28  ;;  %1519 = vmatprep.subr.mxu0 %v554_v57 }
  0xc5   : > { %1520 = vmatpush3.msra.mxu0 %v554_v57 }
 0x12d   : > { %v398_v58 = vpop.xlane.xlu0 %397 }
 0x12e   : > { %v444_v59 = vmul.f32 0.03125, %v398_v58 }
 0x130   : > { %v460_v60 = vadd.f32 1e-05, %v444_v59 }
 0x131   : > { %v401_v61 = vpop.xlane.xlu1 %400  ;;  %v404_v62 = vpop.xlane.xlu0 %403 }
 0x132   : > { %1641 = vrsqrt.f32 %v460_v60  ;;  %v445_v63 = vmul.f32 0.03125, %v401_v61  ;;  %v446_v2 = vmul.f32 0.03125, %v404_v62 }
 0x134   : > { %v461_v3 = vadd.f32 1e-05, %v445_v63  ;;  %v462_v4 = vadd.f32 1e-05, %v446_v2 }
 0x135   : > { %v407_v5 = vpop.xlane.xlu1 %406  ;;  %v410_v6 = vpop.xlane.xlu0 %409 }
 0x136   : > { %1643 = vrsqrt.f32 %v461_v3  ;;  %v447_v7 = vmul.f32 0.03125, %v407_v5  ;;  %v448_v8 = vmul.f32 0.03125, %v410_v6 }
 0x137   : > { %1645 = vrsqrt.f32 %v462_v4 }
 0x138   : > { %v463_v9 = vadd.f32 1e-05, %v447_v7  ;;  %v464_v12 = vadd.f32 1e-05, %v448_v8 }
 0x139   : > { %v413_v13 = vpop.xlane.xlu1 %412  ;;  %v416_v14 = vpop.xlane.xlu0 %415 }
 0x13a   : > { %1647 = vrsqrt.f32 %v463_v9  ;;  %v449_v15 = vmul.f32 0.03125, %v413_v13  ;;  %v450_v18 = vmul.f32 0.03125, %v416_v14 }
 0x13b   : > { %1649 = vrsqrt.f32 %v464_v12 }
 0x13c   : > { %v465_v19 = vadd.f32 1e-05, %v449_v15  ;;  %v466_v22 = vadd.f32 1e-05, %v450_v18 }
 0x13d   : > { %v419_v16 = vpop.xlane.xlu1 %418  ;;  %v422_v26 = vpop.xlane.xlu0 %421 }
 0x13e   : > { %1651 = vrsqrt.f32 %v465_v19  ;;  %v451_v27 = vmul.f32 0.03125, %v419_v16  ;;  %v452_v30 = vmul.f32 0.03125, %v422_v26 }
 0x13f   : > { %v1642_v31 = vpop.eup %1641  ;;  %1653 = vrsqrt.f32 %v466_v22 }
 0x140   : > { %v467_v33 = vadd.f32 1e-05, %v451_v27  ;;  %v468_v34 = vadd.f32 1e-05, %v452_v30  ;;  %v492_v20 = vmul.f32 %v1642_v31, %v1881_v36 }
 0x141   : > { %v425_v38 = vpop.xlane.xlu1 %424  ;;  %v428_v39 = vpop.xlane.xlu0 %427 }
 0x142   : > { %1655 = vrsqrt.f32 %v467_v33  ;;  %v453_v41 = vmul.f32 0.03125, %v425_v38  ;;  %v454_v42 = vmul.f32 0.03125, %v428_v39  ;;  %v515_v43 = vmul.f32 %v1986_v32, %v492_v20 }
 0x143   : > { %v1644_v46 = vpop.eup %1643  ;;  %1657 = vrsqrt.f32 %v468_v34 }
 0x144   : > { %v1646_v24 = vpop.eup %1645  ;;  %v469_v48 = vadd.f32 1e-05, %v453_v41  ;;  %v470_v49 = vadd.f32 1e-05, %v454_v42  ;;  %v538_v50 = vadd.f32 %v1992_v40, %v515_v43  ;;  %v493_v36 = vmul.f32 %v1644_v46, %v1889_v44 }
 0x145   : > { %v431_v51 = vpop.xlane.xlu1 %430  ;;  %v434_v52 = vpop.xlane.xlu0 %433  ;;  %v494_v28 = vmul.f32 %v1646_v24, %v1883_v37 }
 0x146   : > { %1659 = vrsqrt.f32 %v469_v48  ;;  %v455_v29 = vmul.f32 0.03125, %v431_v51  ;;  %v456_v53 = vmul.f32 0.03125, %v434_v52  ;;  %1521 = vmatprep.mubr.msk.f32.mxu0 %vm298_vm0, %v538_v50  ;;  %v516_v56 = vmul.f32 %v1986_v32, %v493_v36 }
 0x147   : > { %v1648_v57 = vpop.eup %1647  ;;  %1661 = vrsqrt.f32 %v470_v49  ;;  %v517_v58 = vmul.f32 %v1986_v32, %v494_v28 }
 0x148   : > { %v1650_v59 = vpop.eup %1649  ;;  %v471_v60 = vadd.f32 1e-05, %v455_v29  ;;  %v472_v61 = vadd.f32 1e-05, %v456_v53  ;;  %v539_v44 = vadd.f32 %v1992_v40, %v516_v56  ;;  %v495_v62 = vmul.f32 %v1648_v57, %v1891_v45 }
 0x149   : > { %v437_v63 = vpop.xlane.xlu1 %436  ;;  %v440_v37 = vpop.xlane.xlu0 %439  ;;  %v540_v2 = vadd.f32 %v1992_v40, %v517_v58  ;;  %v496_v3 = vmul.f32 %v1650_v59, %v1899_v54 }
 0x14a   : > { %1663 = vrsqrt.f32 %v471_v60  ;;  %v457_v4 = vmul.f32 0.03125, %v437_v63  ;;  %v458_v5 = vmul.f32 0.03125, %v440_v37  ;;  %1522 = vmatmul.mubr.msk.f32.vlgmr.msra.gmra.mxu0 %vm298_vm0, %v539_v44  ;;  %v518_v6 = vmul.f32 %v1986_v32, %v495_v62  ;;  %v1189_v44 = vld [vmem:[%s2549_s5 + $0x78] sm:$0xff]  ;;  %v1184_v63 = vld [vmem:[%s2549_s5 + $0x50] sm:$0xff]  ;;  %v1183_v37 = vld [vmem:[%s2549_s5 + $0x48] sm:$0xff] }
 0x14b   : > { %v1652_v7 = vpop.eup %1651  ;;  %1665 = vrsqrt.f32 %v472_v61  ;;  %1524 = vmatprep.mubr.msk.f32.mxu0 %vm298_vm0, %v540_v2  ;;  %v519_v8 = vmul.f32 %v1986_v32, %v496_v3  ;;  %1545 = vmatprep.subr.mxu0 %v1189_v44  ;;  %v1185_v62 = vld [vmem:[%s2549_s5 + $0x58] sm:$0xff]  ;;  %v1182_v2 = vld [vmem:[%s2549_s5 + $0x40] sm:$0xff] }
 0x14c   : > { %v1654_v45 = vpop.eup %1653  ;;  %v473_v9 = vadd.f32 1e-05, %v457_v4  ;;  %v474_v12 = vadd.f32 1e-05, %v458_v5  ;;  %v541_v13 = vadd.f32 %v1992_v40, %v518_v6  ;;  %v497_v54 = vmul.f32 %v1652_v7, %v1901_v55  ;;  %1601 = vmatprep.subr.mxu1 %v1189_v44  ;;  %1546 = vmatpush3.msra.mxu0 %v1189_v44  ;;  %v1181_v3 = vld [vmem:[%s2549_s5 + $0x38] sm:$0xff]  ;;  %v1180_v4 = vld [vmem:[%s2549_s5 + $0x30] sm:$0xff] }
 0x14d   : > { %v443_v14 = vpop.xlane.xlu1 %442  ;;  %v542_v15 = vadd.f32 %v1992_v40, %v519_v8  ;;  %v498_v18 = vmul.f32 %v1654_v45, %v1910_v0  ;;  %1617 = vmatpush3.msra.mxu1 %v1189_v44  ;;  %v1179_v5 = vld [vmem:[%s2549_s5 + $0x28] sm:$0xff]  ;;  %v1178_v6 = vld [vmem:[%s2549_s5 + $0x20] sm:$0xff]  ;;  %v1177_v7 = vld [vmem:[%s2549_s5 + $0x18] sm:$0xff] }
 0x14e   : > { %1667 = vrsqrt.f32 %v473_v9  ;;  %v459_v19 = vmul.f32 0.03125, %v443_v14  ;;  %1525 = vmatmul.mubr.msk.f32.gmra.mxu0 %vm298_vm0, %v541_v13  ;;  %v520_v22 = vmul.f32 %v1986_v32, %v497_v54  ;;  %v1176_v8 = vld [vmem:[%s2549_s5 + $0x10] sm:$0xff]  ;;  %v1175_v45 = vld [vmem:[%s2549_s5 + $0x8] sm:$0xff]  ;;  %v1174_v9 = vld [vmem:[%s2549_s5] sm:$0xff] }
 0x14f   : > { %v1656_v16 = vpop.eup %1655  ;;  %1669 = vrsqrt.f32 %v474_v12  ;;  %1527 = vmatprep.mubr.msk.f32.mxu0 %vm298_vm0, %v542_v15  ;;  %v521_v26 = vmul.f32 %v1986_v32, %v498_v18  ;;  %v2108_v12 = vld [vmem:[%s2548_s4] ss:$0 sm:$0xff] }
 0x150   : > { %v1658_v27 = vpop.eup %1657  ;;  %v475_v30 = vadd.f32 1e-05, %v459_v19  ;;  %v543_v55 = vadd.f32 %v1992_v40, %v520_v22  ;;  %v499_v31 = vmul.f32 %v1656_v16, %v1913_v1 }
 0x151   : > { %v544_v0 = vadd.f32 %v1992_v40, %v521_v26  ;;  %v500_v33 = vmul.f32 %v1658_v27, %v1922_v10 }
 0x152   : > { %1671 = vrsqrt.f32 %v475_v30  ;;  %1528 = vmatmul.mubr.msk.f32.gmra.mxu0 %vm298_vm0, %v543_v55  ;;  %v522_v34 = vmul.f32 %v1986_v32, %v499_v31 }
 0x153   : > { %v1660_v20 = vpop.eup %1659  ;;  %1530 = vmatprep.mubr.msk.f32.mxu0 %vm298_vm0, %v544_v0  ;;  %v523_v38 = vmul.f32 %v1986_v32, %v500_v33 }
 0x154   : > { %v1662_v39 = vpop.eup %1661  ;;  %v545_v41 = vadd.f32 %v1992_v40, %v522_v34  ;;  %v501_v42 = vmul.f32 %v1660_v20, %v1925_v11 }
 0x155   : > { %v546_v1 = vadd.f32 %v1992_v40, %v523_v38  ;;  %v502_v43 = vmul.f32 %v1662_v39, %v1934_v23 }
 0x156   : > { %1531 = vmatmul.mubr.msk.f32.gmra.mxu0 %vm298_vm0, %v545_v41  ;;  %v524_v10 = vmul.f32 %v1986_v32, %v501_v42 }
 0x157   : > { %v1664_v46 = vpop.eup %1663  ;;  %1533 = vmatprep.mubr.msk.f32.mxu0 %vm298_vm0, %v546_v1  ;;  %v525_v24 = vmul.f32 %v1986_v32, %v502_v43 }
 0x158   : > { %v1666_v48 = vpop.eup %1665  ;;  %v547_v49 = vadd.f32 %v1992_v40, %v524_v10  ;;  %v503_v50 = vmul.f32 %v1664_v46, %v1937_v17 }
 0x159   : > { %v548_v11 = vadd.f32 %v1992_v40, %v525_v24  ;;  %v504_v36 = vmul.f32 %v1666_v48, %v1946_v35 }
 0x15a   : > { %1534 = vmatmul.mubr.msk.f32.gmra.mxu0 %vm298_vm0, %v547_v49  ;;  %v526_v23 = vmul.f32 %v1986_v32, %v503_v50 }
 0x15b   : > { %v1668_v51 = vpop.eup %1667  ;;  %1536 = vmatprep.mubr.msk.f32.mxu0 %vm298_vm0, %v548_v11  ;;  %v527_v52 = vmul.f32 %v1986_v32, %v504_v36 }
 0x15c   : > { %v1670_v28 = vpop.eup %1669  ;;  %v549_v29 = vadd.f32 %v1992_v40, %v526_v23  ;;  %v505_v53 = vmul.f32 %v1668_v51, %v1949_v21 }
 0x15d   : > { %v550_v17 = vadd.f32 %v1992_v40, %v527_v52  ;;  %v506_v56 = vmul.f32 %v1670_v28, %v1958_v47 }
 0x15e   : > { %1537 = vmatmul.mubr.msk.f32.gmra.mxu0 %vm298_vm0, %v549_v29  ;;  %v528_v35 = vmul.f32 %v1986_v32, %v505_v53 }
 0x15f   : > { %v1672_v57 = vpop.eup %1671  ;;  %1539 = vmatprep.mubr.msk.f32.mxu0 %vm298_vm0, %v550_v17  ;;  %v529_v58 = vmul.f32 %v1986_v32, %v506_v56 }
 0x160   : > { %v551_v59 = vadd.f32 %v1992_v40, %v528_v35  ;;  %v507_v60 = vmul.f32 %v1672_v57, %v1961_v25  ;;  %v1188_v25 = vld [vmem:[%s2549_s5 + $0x70] sm:$0xff] }
 0x161   : > { %v552_v61 = vadd.f32 %v1992_v40, %v529_v58  ;;  %1547 = vmatprep.subr.mxu0 %v1188_v25  ;;  %1602 = vmatprep.subr.mxu1 %v1188_v25 }
 0x162   : > { %1540 = vmatmul.mubr.msk.f32.gmra.mxu0 %vm298_vm0, %v551_v59  ;;  %v530_v21 = vmul.f32 %v1986_v32, %v507_v60  ;;  %v1187_v32 = vld [vmem:[%s2549_s5 + $0x68] sm:$0xff]  ;;  %1618 = vmatpush3.msra.mxu1 %v1188_v25 }
 0x163   : > { %1542 = vmatprep.mubr.msk.f32.mxu0 %vm298_vm0, %v552_v61  ;;  %1548 = vmatpush3.msra.mxu0 %v1188_v25 }
 0x164   : > { %v553_v47 = vadd.f32 %v1992_v40, %v530_v21  ;;  %1549 = vmatprep.subr.mxu0 %v1187_v32  ;;  %1603 = vmatprep.subr.mxu1 %v1187_v32  ;;  %v1186_v40 = vld [vmem:[%s2549_s5 + $0x60] sm:$0xff] }
 0x165   : > { %1550 = vmatpush3.msra.mxu0 %v1187_v32  ;;  %1619 = vmatpush3.msra.mxu1 %v1187_v32 }
 0x166   : > { %1543 = vmatmul.mubr.msk.f32.gmra.mxu0 %vm298_vm0, %v553_v47  ;;  %1551 = vmatprep.subr.mxu0 %v1186_v40 }
 0x167   : > { %1604 = vmatprep.subr.mxu1 %v1186_v40  ;;  %1552 = vmatpush3.msra.mxu0 %v1186_v40 }
 0x168   : > { %1620 = vmatpush3.msra.mxu1 %v1186_v40  ;;  %1553 = vmatprep.subr.mxu0 %v1185_v62 }
 0x169   : > { %1605 = vmatprep.subr.mxu1 %v1185_v62  ;;  %1554 = vmatpush3.msra.mxu0 %v1185_v62 }
 0x16a   : > { %1621 = vmatpush3.msra.mxu1 %v1185_v62  ;;  %1555 = vmatprep.subr.mxu0 %v1184_v63 }
 0x16b   : > { %1606 = vmatprep.subr.mxu1 %v1184_v63  ;;  %1556 = vmatpush3.msra.mxu0 %v1184_v63 }
 0x16c   : > { %1622 = vmatpush3.msra.mxu1 %v1184_v63  ;;  %1557 = vmatprep.subr.mxu0 %v1183_v37 }
 0x16d   : > { %1607 = vmatprep.subr.mxu1 %v1183_v37  ;;  %1558 = vmatpush3.msra.mxu0 %v1183_v37 }
 0x16e   : > { %1623 = vmatpush3.msra.mxu1 %v1183_v37  ;;  %1559 = vmatprep.subr.mxu0 %v1182_v2 }
 0x16f   : > { %1608 = vmatprep.subr.mxu1 %v1182_v2  ;;  %1560 = vmatpush3.msra.mxu0 %v1182_v2 }
 0x170   : > { %1624 = vmatpush3.msra.mxu1 %v1182_v2  ;;  %1561 = vmatprep.subr.mxu0 %v1181_v3 }
 0x171   : > { %1609 = vmatprep.subr.mxu1 %v1181_v3  ;;  %1562 = vmatpush3.msra.mxu0 %v1181_v3 }
 0x172   : > { %1625 = vmatpush3.msra.mxu1 %v1181_v3  ;;  %1563 = vmatprep.subr.mxu0 %v1180_v4 }
 0x173   : > { %1610 = vmatprep.subr.mxu1 %v1180_v4  ;;  %1564 = vmatpush3.msra.mxu0 %v1180_v4 }
 0x174   : > { %1626 = vmatpush3.msra.mxu1 %v1180_v4  ;;  %1565 = vmatprep.subr.mxu0 %v1179_v5 }
 0x175   : > { %1611 = vmatprep.subr.mxu1 %v1179_v5  ;;  %1566 = vmatpush3.msra.mxu0 %v1179_v5 }
 0x176   : > { %1627 = vmatpush3.msra.mxu1 %v1179_v5  ;;  %1567 = vmatprep.subr.mxu0 %v1178_v6 }
 0x177   : > { %1612 = vmatprep.subr.mxu1 %v1178_v6  ;;  %1568 = vmatpush3.msra.mxu0 %v1178_v6 }
 0x178   : > { %1628 = vmatpush3.msra.mxu1 %v1178_v6  ;;  %1569 = vmatprep.subr.mxu0 %v1177_v7 }
 0x179   : > { %1613 = vmatprep.subr.mxu1 %v1177_v7  ;;  %1570 = vmatpush3.msra.mxu0 %v1177_v7 }
 0x17a   : > { %1629 = vmatpush3.msra.mxu1 %v1177_v7  ;;  %1571 = vmatprep.subr.mxu0 %v1176_v8 }
 0x17b   : > { %1614 = vmatprep.subr.mxu1 %v1176_v8  ;;  %1572 = vmatpush3.msra.mxu0 %v1176_v8 }
 0x17c   : > { %1630 = vmatpush3.msra.mxu1 %v1176_v8  ;;  %1573 = vmatprep.subr.mxu0 %v1175_v45 }
 0x17d   : > { %1615 = vmatprep.subr.mxu1 %v1175_v45  ;;  %1574 = vmatpush3.msra.mxu0 %v1175_v45 }
 0x17e   : > { %1631 = vmatpush3.msra.mxu1 %v1175_v45  ;;  %1575 = vmatprep.subr.mxu0 %v1174_v9 }
 0x17f   : > { %1616 = vmatprep.subr.mxu1 %v1174_v9  ;;  %1576 = vmatpush3.msra.mxu0 %v1174_v9 }
 0x180   : > { %1632 = vmatpush3.msra.mxu1 %v1174_v9 }
 0x20a   : > { %v1523_v13 = vpop.f32.mrf.mxu0 }
 0x20b   : > { %v2111_v54 = vadd.f32 %v1523_v13, %v2108_v12 }
 0x20c   : > { %v679_v14 = vpop.f32.mrf.mxu0 }
 0x20d   : > { %v2114_v15 = vmul.f32 0.70710677, %v2111_v54  ;;  %v2117_v18 = vadd.f32 %v2108_v12, %v679_v14  ;;  %v2175_v9 = vmul.f32 0.5, %v2111_v54 }
 0x20e   : > { %v1526_v19 = vpop.f32.mrf.mxu0 }
 0x20f   : > { %v775_v22 = vand.u32 2147483647, %v2114_v15  ;;  %v2121_v16 = vmul.f32 0.70710677, %v2117_v18  ;;  %v2124_v26 = vadd.f32 %v1526_v19, %v2108_v12  ;;  %vm1079_vm1 = vcmp.lt.f32.partialorder %v2114_v15, 0.0 }
 0x210   : > { %v689_v27 = vpop.f32.mrf.mxu0 }
 0x211   : > { %v791_v30 = vmul.f32 0.3275911, %v775_v22  ;;  %v774_v55 = vand.u32 2147483647, %v2121_v16  ;;  %v2128_v31 = vmul.f32 0.70710677, %v2124_v26  ;;  %v2131_v0 = vadd.f32 %v2108_v12, %v689_v27 }
 0x212   : > { %v1529_v33 = vpop.f32.mrf.mxu0  ;;  %v983_v20 = vsub.f32 0.0, %v775_v22  ;;  %vm1078_vm2 = vcmp.lt.f32.partialorder %v2121_v16, 0.0 }
 0x213   : > { %v807_v34 = vadd.f32 1.0, %v791_v30  ;;  %v777_v38 = vand.u32 2147483647, %v2128_v31  ;;  %v2135_v39 = vmul.f32 0.70710677, %v2131_v0  ;;  %v982_v42 = vsub.f32 0.0, %v774_v55 }
 0x214   : > { %v699_v41 = vpop.f32.mrf.mxu0  ;;  %v999_v43 = vmul.f32 %v983_v20, %v775_v22  ;;  %v2138_v10 = vadd.f32 %v1529_v33, %v2108_v12  ;;  %v790_v24 = vmul.f32 0.3275911, %v774_v55  ;;  %v2179_v22 = vmul.f32 0.5, %v2117_v18 }
 0x215   : > { %1673 = vrcp.f32 %v807_v34  ;;  %v2141_v46 = vadd.f32 %v2108_v12, %v699_v41  ;;  %v985_v48 = vsub.f32 0.0, %v777_v38  ;;  %v776_v49 = vand.u32 2147483647, %v2135_v39 }
 0x216   : > { %v1532_v1 = vpop.f32.mrf.mxu0  ;;  %v2145_v11 = vmul.f32 0.70710677, %v2138_v10  ;;  %v998_v36 = vmul.f32 %v982_v42, %v774_v55  ;;  %v1016_v51 = vmul.f32 1.442695, %v999_v43  ;;  %v793_v52 = vmul.f32 0.3275911, %v777_v38 }
 0x217   : > { %v2148_v23 = vmul.f32 0.70710677, %v2141_v46  ;;  %v806_v53 = vadd.f32 1.0, %v790_v24  ;;  %v1001_v17 = vmul.f32 %v985_v48, %v777_v38  ;;  %v984_v56 = vsub.f32 0.0, %v776_v49 }
 0x218   : > { %v709_v50 = vpop.f32.mrf.mxu0  ;;  %v779_v28 = vand.u32 2147483647, %v2145_v11  ;;  %v2152_v35 = vadd.f32 %v1532_v1, %v2108_v12  ;;  %v792_v57 = vmul.f32 0.3275911, %v776_v49  ;;  %v1014_v58 = vmul.f32 1.442695, %v998_v36 }
 0x219   : > { %v778_v59 = vand.u32 2147483647, %v2148_v23  ;;  %1675 = vpow2.f32 %v1016_v51  ;;  %v809_v61 = vadd.f32 1.0, %v793_v52  ;;  %v2159_v47 = vadd.f32 %v2108_v12, %v709_v50 }
 0x21a   : > { %v1535_v29 = vpop.f32.mrf.mxu0  ;;  %v2156_v60 = vmul.f32 0.70710677, %v2152_v35  ;;  %v987_v21 = vsub.f32 0.0, %v779_v28  ;;  %1677 = vrcp.f32 %v806_v53  ;;  %v1020_v25 = vmul.f32 1.442695, %v1001_v17 }
 0x21b   : > { %v1000_v32 = vmul.f32 %v984_v56, %v776_v49  ;;  %v808_v40 = vadd.f32 1.0, %v792_v57  ;;  %v795_v62 = vmul.f32 0.3275911, %v779_v28  ;;  %v2162_v63 = vmul.f32 0.70710677, %v2159_v47 }
 0x21c   : > { %v719_v44 = vpop.f32.mrf.mxu0  ;;  %v2165_v37 = vadd.f32 %v1535_v29, %v2108_v12  ;;  %1679 = vpow2.f32 %v1014_v58  ;;  %v794_v3 = vmul.f32 0.3275911, %v778_v59  ;;  %v986_v4 = vsub.f32 0.0, %v778_v59 }
 0x21d   : > { %v781_v5 = vand.u32 2147483647, %v2156_v60  ;;  %1681 = vrcp.f32 %v809_v61  ;;  %v1003_v7 = vmul.f32 %v987_v21, %v779_v28  ;;  %v1018_v13 = vmul.f32 1.442695, %v1000_v32 }
 0x21e   : > { %v2172_v8 = vmul.f32 0.70710677, %v2165_v37  ;;  %v1538_v45 = vpop.f32.mrf.mxu0  ;;  %1683 = vpow2.f32 %v1020_v25  ;;  %v780_v14 = vand.u32 2147483647, %v2162_v63  ;;  %v811_v27 = vadd.f32 1.0, %v795_v62 }
 0x21f   : > { %1685 = vrcp.f32 %v808_v40  ;;  %v810_v30 = vadd.f32 1.0, %v794_v3  ;;  %v1002_v55 = vmul.f32 %v986_v4, %v778_v59  ;;  %v989_v33 = vsub.f32 0.0, %v781_v5 }
 0x220   : > { %v2182_v34 = vadd.f32 %v2108_v12, %v719_v44  ;;  %v1024_v54 = vmul.f32 1.442695, %v1003_v7  ;;  %v783_v38 = vand.u32 2147483647, %v2172_v8  ;;  %v2187_v41 = vadd.f32 %v1538_v45, %v2108_v12  ;;  %v729_v42 = vpop.f32.mrf.mxu0 }
 0x221   : > { %1687 = vpow2.f32 %v1018_v13  ;;  %v797_v18 = vmul.f32 0.3275911, %v781_v5  ;;  %v988_v1 = vsub.f32 0.0, %v780_v14  ;;  %v2193_v48 = vmul.f32 0.5, %v2124_v26 }
 0x222   : > { %v2167_v2 = vpop.eup %1673  ;;  %2564 = vst [vmem:[#allocation2_spill] sm:$0xff] %v2187_v41  ;;  %v2190_v43 = vmul.f32 0.70710677, %v2182_v34  ;;  %v2196_v49 = vmul.f32 0.5, %v2131_v0  ;;  %1689 = vrcp.f32 %v811_v27  ;;  %v1022_v50 = vmul.f32 1.442695, %v1002_v55  ;;  %v1541_v17 = vpop.f32.mrf.mxu0 }
 0x223   : > { %v839_v6 = vmul.f32 1.0614054, %v2167_v2  ;;  %1691 = vrcp.f32 %v810_v30  ;;  %v1005_v36 = vmul.f32 %v989_v33, %v781_v5  ;;  %v796_v28 = vmul.f32 0.3275911, %v780_v14 }
 0x224   : > { %v782_v51 = vand.u32 2147483647, %v2190_v43  ;;  %v991_v29 = vsub.f32 0.0, %v783_v38  ;;  %v2201_v53 = vmul.f32 0.70710677, %v2187_v41  ;;  %1693 = vpow2.f32 %v1024_v54 }
 0x225   : > { %v855_v19 = vadd.f32 -1.4531521, %v839_v6  ;;  %v2204_v26 = vmul.f32 0.5, %v2138_v10  ;;  %v813_v0 = vadd.f32 1.0, %v797_v18  ;;  %v1004_v57 = vmul.f32 %v988_v1, %v780_v14  ;;  %v739_v6 = vpop.f32.mrf.mxu0 }
 0x226   : > { %v1676_v56 = vpop.eup %1675  ;;  %v990_v61 = vsub.f32 0.0, %v782_v51  ;;  %v785_v21 = vand.u32 2147483647, %v2201_v53  ;;  %v2210_v44 = vadd.f32 %v2108_v12, %v729_v42  ;;  %1695 = vpow2.f32 %v1022_v50 }
 0x227   : > { %v871_v20 = vmul.f32 %v2167_v2, %v855_v19  ;;  %v2206_v58 = vpop.eup %1677  ;;  %v1028_v25 = vmul.f32 1.442695, %v1005_v36  ;;  %v799_v32 = vmul.f32 0.3275911, %v783_v38  ;;  %v2213_v40 = vadd.f32 %v1541_v17, %v2108_v12  ;;  %v1544_v50 = vpop.f32.mrf.mxu0 }
 0x228   : > { %2565 = vst [vmem:[#allocation3_spill] sm:$0xff] %v2210_v44  ;;  %v812_v3 = vadd.f32 1.0, %v796_v28  ;;  %v1007_v4 = vmul.f32 %v991_v29, %v783_v38  ;;  %v2219_v5 = vmul.f32 0.70710677, %v2210_v44  ;;  %1697 = vrcp.f32 %v813_v0 }
 0x229   : > { %v887_v24 = vadd.f32 1.4214138, %v871_v20  ;;  %2566 = vst [vmem:[#allocation4_spill] sm:$0xff] %v2213_v40  ;;  %v2215_v62 = vpop.eup %1679  ;;  %v1026_v45 = vmul.f32 1.442695, %v1004_v57  ;;  %v1006_v30 = vmul.f32 %v990_v61, %v782_v51  ;;  %v993_v55 = vsub.f32 0.0, %v785_v21 }
 0x22a   : > { %2567 = vst [vmem:[#allocation5_spill] sm:$0xff] %v2219_v5  ;;  %v2221_v7 = vpop.eup %1681  ;;  %v798_v13 = vmul.f32 0.3275911, %v782_v51  ;;  %v2224_v14 = vmul.f32 0.70710677, %v2213_v40  ;;  %v2233_v54 = vmul.f32 0.5, %v2141_v46  ;;  %1699 = vpow2.f32 %v1028_v25 }
 0x22b   : > { %v903_v52 = vmul.f32 %v2167_v2, %v887_v24  ;;  %v2226_v19 = vpop.eup %1683  ;;  %v784_v33 = vand.u32 2147483647, %v2219_v5  ;;  %v815_v38 = vadd.f32 1.0, %v799_v32  ;;  %v801_v42 = vmul.f32 0.3275911, %v785_v21 }
 0x22c   : > { %2568 = vst [vmem:[#allocation6_spill] sm:$0xff] %v2224_v14  ;;  %v2229_v20 = vpop.eup %1685  ;;  %1701 = vrcp.f32 %v812_v3  ;;  %v1032_v1 = vmul.f32 1.442695, %v1007_v4  ;;  %v787_v24 = vand.u32 2147483647, %v2224_v14  ;;  %v2238_v36 = vmul.f32 0.5, %v2152_v35 }
 0x22d   : > { %v919_v59 = vadd.f32 -0.28449672, %v903_v52  ;;  %1703 = vpow2.f32 %v1026_v45  ;;  %v814_v51 = vadd.f32 1.0, %v798_v13  ;;  %v992_v52 = vsub.f32 0.0, %v784_v33 }
 0x22e   : > { %v2240_v28 = vpop.eup %1687  ;;  %v1030_v29 = vmul.f32 1.442695, %v1006_v30  ;;  %v1009_v17 = vmul.f32 %v993_v55, %v785_v21  ;;  %v2243_v0 = vadd.f32 %v2108_v12, %v739_v6  ;;  %1705 = vrcp.f32 %v815_v38  ;;  %v749_v21 = vpop.f32.mrf.mxu0 }
 0x22f   : > { %v935_v10 = vmul.f32 %v2167_v2, %v919_v59  ;;  %v817_v57 = vadd.f32 1.0, %v801_v42  ;;  %v800_v59 = vmul.f32 0.3275911, %v784_v33  ;;  %v2248_v61 = vadd.f32 %v1544_v50, %v2108_v12 }
 0x230   : > { %2569 = vst [vmem:[#allocation7_spill] sm:$0xff] %v2243_v0  ;;  %1707 = vpow2.f32 %v1032_v1  ;;  %v803_v32 = vmul.f32 0.3275911, %v787_v24  ;;  %v995_v3 = vsub.f32 0.0, %v787_v24  ;;  %v1036_v13 = vmul.f32 1.442695, %v1009_v17 }
 0x231   : > { %v951_v27 = vadd.f32 0.2548296, %v935_v10  ;;  %2570 = vst [vmem:[#allocation8_spill] sm:$0xff] %v2248_v61  ;;  %1709 = vrcp.f32 %v814_v51  ;;  %v1008_v10 = vmul.f32 %v992_v52, %v784_v33  ;;  %v2256_v4 = vmul.f32 0.70710677, %v2248_v61 }
 0x232   : > { %1711 = vpow2.f32 %v1030_v29  ;;  %v816_v30 = vadd.f32 1.0, %v800_v59  ;;  %v2263_v38 = vadd.f32 %v2108_v12, %v749_v21  ;;  %v1011_v52 = vmul.f32 %v995_v3, %v787_v24 }
 0x233   : > { %v967_v18 = vmul.f32 %v2167_v2, %v951_v27  ;;  %v2245_v2 = vpop.eup %1689  ;;  %2572 = vst [vmem:[#allocation10_spill] sm:$0xff] %v2256_v4  ;;  %1713 = vrcp.f32 %v817_v57  ;;  %v789_v55 = vand.u32 2147483647, %v2256_v4  ;;  %v1034_v51 = vmul.f32 1.442695, %v1008_v10 }
 0x234   : > { %v2250_v35 = vpop.eup %1691  ;;  %2573 = vst [vmem:[#allocation11_spill] sm:$0xff] %v2263_v38  ;;  %v2270_v29 = vmul.f32 0.70710677, %v2263_v38  ;;  %v2275_v12 = vmul.f32 0.5, %v2165_v37  ;;  %1715 = vpow2.f32 %v1036_v13  ;;  %v838_v59 = vmul.f32 1.0614054, %v2206_v58 }
 0x235   : > { %v1047_v46 = vmul.f32 %v1676_v56, %v967_v18  ;;  %v2253_v56 = vmul.f32 0.70710677, %v2243_v0  ;;  %v2258_v6 = vpop.eup %1693  ;;  %v819_v18 = vadd.f32 1.0, %v803_v32  ;;  %1717 = vrcp.f32 %v816_v30 }
 0x236   : > { %v2265_v42 = vpop.eup %1695  ;;  %2574 = vst [vmem:[#allocation12_spill] sm:$0xff] %v2270_v29  ;;  %2575 = vst [vmem:[#allocation13_spill] sm:$0xff] %v2275_v12  ;;  %v788_v32 = vand.u32 2147483647, %v2270_v29  ;;  %v2282_v24 = vmul.f32 0.5, %v2182_v34  ;;  %vm1081_vm3 = vcmp.lt.f32.partialorder %v2128_v31, 0.0 }
 0x237   : > { %v1063_v25 = vsub.f32 1.0, %v1047_v46  ;;  %2571 = vst [vmem:[#allocation9_spill] sm:$0xff] %v2253_v56  ;;  %v786_v27 = vand.u32 2147483647, %v2253_v56  ;;  %v805_v46 = vmul.f32 0.3275911, %v789_v55  ;;  %v2272_v17 = vpop.eup %1697  ;;  %1719 = vrcp.f32 %v819_v18 }
 0x238   : > { %v2279_v21 = vpop.eup %1699  ;;  %v854_v3 = vadd.f32 -1.4531521, %v838_v59  ;;  %1721 = vpow2.f32 %v1034_v51  ;;  %v2286_v37 = vmul.f32 1.442695, %v1011_v52  ;;  %v840_v34 = vmul.f32 1.0614054, %v2229_v20 }
 0x239   : > { %v1095_v45 = vsub.f32 0.0, %v1063_v25  ;;  %v802_v1 = vmul.f32 0.3275911, %v786_v27  ;;  %v994_v50 = vsub.f32 0.0, %v786_v27  ;;  %v821_v13 = vadd.f32 1.0, %v805_v46 }
 0x23a   : > { %v841_v18 = vmul.f32 1.0614054, %v2221_v7  ;;  %v804_v61 = vmul.f32 0.3275911, %v788_v32  ;;  %v842_v51 = vmul.f32 1.0614054, %v2250_v35 }
 0x23b   : > { %v1111_v33 = vsel %vm1079_vm1, %v1095_v45, %v1063_v25  ;;  %v1010_v15 = vmul.f32 %v994_v50, %v786_v27  ;;  %v997_v25 = vsub.f32 0.0, %v789_v55  ;;  %v818_v10 = vadd.f32 1.0, %v802_v1  ;;  %v2284_v45 = vpop.eup %1701 }
 0x23c   : > { %v1143_v57 = vadd.f32 1.0, %v1111_v33  ;;  %v996_v33 = vsub.f32 0.0, %v788_v32  ;;  %v2288_v30 = vpop.eup %1703  ;;  %v870_v50 = vmul.f32 %v2206_v58, %v854_v3  ;;  %v856_v38 = vadd.f32 -1.4531521, %v840_v34 }
 0x23d   : > { %v1038_v1 = vmul.f32 1.442695, %v1010_v15  ;;  %v1013_v59 = vmul.f32 %v997_v25, %v789_v55  ;;  %v2297_v52 = vpop.eup %1705  ;;  %1723 = vrcp.f32 %v818_v10  ;;  %v857_v4 = vadd.f32 -1.4531521, %v841_v18 }
 0x23e   : > { %v2291_v27 = vmul.f32 %v1143_v57, %v2175_v9  ;;  %v886_v46 = vadd.f32 1.4214138, %v870_v50  ;;  %v2299_v29 = vpop.eup %1707  ;;  %1725 = vrcp.f32 %v821_v13  ;;  %v1012_v9 = vmul.f32 %v996_v33, %v788_v32 }
 0x23f   : > { %v858_v57 = vadd.f32 -1.4531521, %v842_v51  ;;  %v843_v3 = vmul.f32 1.0614054, %v2245_v2  ;;  %v2302_v40 = vpop.eup %1709  ;;  %v872_v15 = vmul.f32 %v2229_v20, %v856_v38  ;;  %v873_v25 = vmul.f32 %v2221_v7, %v857_v4 }
 0x240   : > { %v902_v55 = vmul.f32 %v2206_v58, %v886_v46  ;;  %v844_v10 = vmul.f32 1.0614054, %v2284_v45  ;;  %v2308_v50 = vpop.eup %1711  ;;  %v2310_v34 = vmul.f32 1.442695, %v1013_v59  ;;  %v820_v18 = vadd.f32 1.0, %v804_v61 }
 0x241   : > { %v874_v32 = vmul.f32 %v2250_v35, %v858_v57  ;;  %v859_v13 = vadd.f32 -1.4531521, %v843_v3  ;;  %v2313_v33 = vpop.eup %1713  ;;  %1727 = vpow2.f32 %v1038_v1  ;;  %v888_v14 = vadd.f32 1.4214138, %v872_v15 }
 0x242   : > { %v918_v51 = vadd.f32 -0.28449672, %v902_v55  ;;  %v889_v46 = vadd.f32 1.4214138, %v873_v25  ;;  %v2315_v41 = vmul.f32 1.442695, %v1012_v9  ;;  %v2322_v3 = vpop.eup %1715  ;;  %1729 = vrcp.f32 %v820_v18 }
 0x243   : > { %v890_v38 = vadd.f32 1.4214138, %v874_v32  ;;  %v875_v4 = vmul.f32 %v2245_v2, %v859_v13  ;;  %v860_v12 = vadd.f32 -1.4531521, %v844_v10  ;;  %v904_v59 = vmul.f32 %v2229_v20, %v888_v14  ;;  %2576 = vst [vmem:[#allocation14_spill] sm:$0xff] %v2322_v3  ;;  %v2327_v25 = vpop.eup %1717 }
 0x244   : > { %v934_v56 = vmul.f32 %v2206_v58, %v918_v51  ;;  %v905_v61 = vmul.f32 %v2221_v7, %v889_v46  ;;  %v845_v57 = vmul.f32 1.0614054, %v2272_v17  ;;  %v846_v15 = vmul.f32 1.0614054, %v2302_v40  ;;  %v2329_v14 = vpop.eup %1719 }
 0x245   : > { %v906_v1 = vmul.f32 %v2250_v35, %v890_v38  ;;  %v891_v55 = vadd.f32 1.4214138, %v875_v4  ;;  %v876_v9 = vmul.f32 %v2284_v45, %v860_v12  ;;  %v920_v32 = vadd.f32 -0.28449672, %v904_v59  ;;  %v2333_v4 = vpop.eup %1721 }
 0x246   : > { %v950_v10 = vadd.f32 0.2548296, %v934_v56  ;;  %v921_v13 = vadd.f32 -0.28449672, %v905_v61  ;;  %v861_v38 = vadd.f32 -1.4531521, %v845_v57  ;;  %1731 = vpow2.f32 %v2286_v37 }
 0x247   : > { %v922_v51 = vadd.f32 -0.28449672, %v906_v1  ;;  %v907_v46 = vmul.f32 %v2245_v2, %v891_v55  ;;  %v892_v0 = vadd.f32 1.4214138, %v876_v9  ;;  %2577 = vst [vmem:[#allocation15_spill] sm:$0xff] %v2333_v4  ;;  %v936_v3 = vmul.f32 %v2229_v20, %v920_v32 }
 0x248   : > { %v966_v12 = vmul.f32 %v2206_v58, %v950_v10  ;;  %v937_v18 = vmul.f32 %v2221_v7, %v921_v13  ;;  %v862_v56 = vadd.f32 -1.4531521, %v846_v15  ;;  %v877_v1 = vmul.f32 %v2272_v17, %v861_v38 }
 0x249   : > { %v938_v59 = vmul.f32 %v2250_v35, %v922_v51  ;;  %v923_v61 = vadd.f32 -0.28449672, %v907_v46  ;;  %v908_v5 = vmul.f32 %v2284_v45, %v892_v0  ;;  %v952_v9 = vadd.f32 0.2548296, %v936_v3 }
 0x24a   : > { %v1046_v55 = vmul.f32 %v2215_v62, %v966_v12  ;;  %v953_v57 = vadd.f32 0.2548296, %v937_v18  ;;  %v878_v4 = vmul.f32 %v2302_v40, %v862_v56  ;;  %v2343_v44 = vpop.eup %1723  ;;  %vm1080_vm4 = vcmp.lt.f32.partialorder %v2135_v39, 0.0 }
 0x24b   : > { %v954_v58 = vadd.f32 0.2548296, %v938_v59  ;;  %v939_v15 = vmul.f32 %v2245_v2, %v923_v61  ;;  %v924_v10 = vadd.f32 -0.28449672, %v908_v5  ;;  %v893_v32 = vadd.f32 1.4214138, %v877_v1  ;;  %v2348_v0 = vpop.eup %1725 }
 0x24c   : > { %vm1082_vm5 = vcmp.lt.f32.partialorder %v2148_v23, 0.0  ;;  %v1062_v62 = vsub.f32 1.0, %v1046_v55  ;;  %v968_v3 = vmul.f32 %v2229_v20, %v952_v9  ;;  %v969_v13 = vmul.f32 %v2221_v7, %v953_v57 }
 0x24d   : > { %v894_v51 = vadd.f32 1.4214138, %v878_v4  ;;  %v970_v46 = vmul.f32 %v2250_v35, %v954_v58  ;;  %v955_v38 = vadd.f32 0.2548296, %v939_v15  ;;  %v940_v12 = vmul.f32 %v2284_v45, %v924_v10 }
 0x24e   : > { %v909_v18 = vmul.f32 %v2272_v17, %v893_v32  ;;  %vm1083_vm6 = vcmp.lt.f32.partialorder %v2145_v11, 0.0  ;;  %v1094_v5 = vsub.f32 0.0, %v1062_v62  ;;  %v1048_v56 = vmul.f32 %v2240_v28, %v968_v3  ;;  %v2360_v20 = vpop.eup %1727 }
 0x24f   : > { %v1049_v59 = vmul.f32 %v2226_v19, %v969_v13  ;;  %v910_v61 = vmul.f32 %v2302_v40, %v894_v51  ;;  %v1050_v7 = vmul.f32 %v2265_v42, %v970_v46  ;;  %v971_v35 = vmul.f32 %v2245_v2, %v955_v38  ;;  %v2371_v13 = vpop.eup %1729 }
 0x250   : > { %v956_v4 = vadd.f32 0.2548296, %v940_v12  ;;  %v925_v1 = vadd.f32 -0.28449672, %v909_v18  ;;  %v1110_v55 = vsel %vm1078_vm2, %v1094_v5, %v1062_v62  ;;  %v1064_v9 = vsub.f32 1.0, %v1048_v56 }
 0x251   : > { %v1065_v57 = vsub.f32 1.0, %v1049_v59  ;;  %v926_v58 = vadd.f32 -0.28449672, %v910_v61  ;;  %v1142_v15 = vadd.f32 1.0, %v1110_v55  ;;  %v1066_v28 = vsub.f32 1.0, %v1050_v7 }
 0x252   : > { %v1051_v19 = vmul.f32 %v2258_v6, %v971_v35  ;;  %v972_v10 = vmul.f32 %v2284_v45, %v956_v4  ;;  %vm1084_vm7 = vcmp.lt.f32.partialorder %v2162_v63, 0.0  ;;  %v1096_v32 = vsub.f32 0.0, %v1064_v9 }
 0x253   : > { %v1097_v42 = vsub.f32 0.0, %v1065_v57  ;;  %v941_v2 = vmul.f32 %v2272_v17, %v925_v1  ;;  %v942_v3 = vmul.f32 %v2302_v40, %v926_v58  ;;  %v1158_v16 = vmul.f32 %v1142_v15, %v2179_v22 }
 0x254   : > { %v1098_v62 = vsub.f32 0.0, %v1066_v28  ;;  %v1067_v51 = vsub.f32 1.0, %v1051_v19  ;;  %v1052_v46 = vmul.f32 %v2288_v30, %v972_v10  ;;  %v1112_v6 = vsel %vm1080_vm4, %v1096_v32, %v1064_v9 }
 0x255   : > { %v1113_v45 = vsel %vm1081_vm3, %v1097_v42, %v1065_v57  ;;  %v957_v38 = vadd.f32 0.2548296, %v941_v2  ;;  %v958_v12 = vadd.f32 0.2548296, %v942_v3  ;;  %vm1085_vm8 = vcmp.lt.f32.partialorder %v2156_v60, 0.0  ;;  %1577 = vmatprep.mubr.f32.mxu0 %v1158_v16 }
 0x256   : > { %v1144_v18 = vadd.f32 1.0, %v1112_v6  ;;  %v1145_v5 = vadd.f32 1.0, %v1113_v45  ;;  %v1114_v22 = vsel %vm1082_vm5, %v1098_v62, %v1066_v28  ;;  %v1099_v56 = vsub.f32 0.0, %v1067_v51  ;;  %1578 = vmatmul.mubr.f32.vlgmr.msra.gmra.mxu0 %v2291_v27 }
 0x257   : > { %vm1086_vm9 = vcmp.lt.f32.partialorder %v2190_v43, 0.0  ;;  %v1146_v39 = vadd.f32 1.0, %v1114_v22  ;;  %v1068_v30 = vsub.f32 1.0, %v1052_v46  ;;  %v973_v31 = vmul.f32 %v2272_v17, %v957_v38 }
 0x258   : > { %v974_v59 = vmul.f32 %v2302_v40, %v958_v12  ;;  %v1160_v61 = vmul.f32 %v1144_v18, %v2196_v49  ;;  %v1161_v7 = vmul.f32 %v1145_v5, %v2193_v48  ;;  %v1115_v35 = vsel %vm1083_vm6, %v1099_v56, %v1067_v51 }
 0x259   : > { %v847_v23 = vmul.f32 1.0614054, %v2297_v52  ;;  %v1162_v4 = vmul.f32 %v1146_v39, %v2233_v54  ;;  %v1147_v1 = vadd.f32 1.0, %v1115_v35  ;;  %v1100_v55 = vsub.f32 0.0, %v1068_v30 }
 0x25a   : > { %v1053_v27 = vmul.f32 %v2279_v21, %v973_v31  ;;  %1580 = vmatprep.mubr.f32.mxu0 %v1160_v61  ;;  %v1054_v17 = vmul.f32 %v2308_v50, %v974_v59  ;;  %v848_v40 = vmul.f32 1.0614054, %v2327_v25  ;;  %v849_v49 = vmul.f32 1.0614054, %v2313_v33 }
 0x25b   : > { %v863_v9 = vadd.f32 -1.4531521, %v847_v23  ;;  %1581 = vmatmul.mubr.f32.gmra.mxu0 %v1161_v7  ;;  %v1116_v11 = vsel %vm1084_vm7, %v1100_v55, %v1068_v30  ;;  %v1132_v48 = vmul.f32 0.5, %v2159_v47  ;;  %v850_v54 = vmul.f32 1.0614054, %v2343_v44 }
 0x25c   : > { %v1069_v57 = vsub.f32 1.0, %v1053_v27  ;;  %1583 = vmatprep.mubr.f32.mxu0 %v1162_v4  ;;  %v1148_v58 = vadd.f32 1.0, %v1116_v11  ;;  %v1070_v21 = vsub.f32 1.0, %v1054_v17  ;;  %v864_v50 = vadd.f32 -1.4531521, %v848_v40 }
 0x25d   : > { %v879_v15 = vmul.f32 %v2297_v52, %v863_v9  ;;  %v1163_v28 = vmul.f32 %v1147_v1, %v2204_v26  ;;  %v865_v10 = vadd.f32 -1.4531521, %v849_v49  ;;  %v866_v32 = vadd.f32 -1.4531521, %v850_v54 }
 0x25e   : > { %v1101_v19 = vsub.f32 0.0, %v1069_v57  ;;  %v1164_v42 = vmul.f32 %v1148_v58, %v1132_v48  ;;  %v1102_v2 = vsub.f32 0.0, %v1070_v21  ;;  %v880_v3 = vmul.f32 %v2327_v25, %v864_v50 }
 0x25f   : > { %v895_v63 = vadd.f32 1.4214138, %v879_v15  ;;  %1584 = vmatmul.mubr.f32.gmra.mxu0 %v1163_v28  ;;  %v881_v16 = vmul.f32 %v2313_v33, %v865_v10  ;;  %v882_v62 = vmul.f32 %v2343_v44, %v866_v32  ;;  %v851_v51 = vmul.f32 1.0614054, %v2329_v14  ;;  %v2578_v28 = vld [vmem:[#allocation3_spill] sm:$0xff] }
 0x260   : > { %v1117_v47 = vsel %vm1085_vm8, %v1101_v19, %v1069_v57  ;;  %1586 = vmatprep.mubr.f32.mxu1 %v1164_v42  ;;  %v1118_v46 = vsel %vm1086_vm9, %v1102_v2, %v1070_v21  ;;  %v896_v45 = vadd.f32 1.4214138, %v880_v3  ;;  %v852_v31 = vmul.f32 1.0614054, %v2371_v13  ;;  %v2579_v42 = vld [vmem:[#allocation15_spill] sm:$0xff] }
 0x261   : > { %v1149_v26 = vadd.f32 1.0, %v1117_v47  ;;  %v911_v6 = vmul.f32 %v2297_v52, %v895_v63  ;;  %v1150_v38 = vadd.f32 1.0, %v1118_v46  ;;  %v897_v12 = vadd.f32 1.4214138, %v881_v16 }
 0x262   : > { %v898_v60 = vadd.f32 1.4214138, %v882_v62  ;;  %v912_v22 = vmul.f32 %v2327_v25, %v896_v45  ;;  %v867_v56 = vadd.f32 -1.4531521, %v851_v51  ;;  %v868_v23 = vadd.f32 -1.4531521, %v852_v31  ;;  %v1732_v51 = vpop.eup %1731 }
 0x263   : > { %v1165_v18 = vmul.f32 %v1149_v26, %v2238_v36  ;;  %v927_v5 = vadd.f32 -0.28449672, %v911_v6  ;;  %v1166_v39 = vmul.f32 %v1150_v38, %v2282_v24  ;;  %v913_v30 = vmul.f32 %v2313_v33, %v897_v12  ;;  %v2582_v6 = vld [vmem:[#allocation7_spill] sm:$0xff]  ;;  %v2583_v31 = vld [vmem:[#allocation9_spill] sm:$0xff] }
 0x264   : > { %v914_v43 = vmul.f32 %v2343_v44, %v898_v60  ;;  %v928_v59 = vadd.f32 -0.28449672, %v912_v22  ;;  %v883_v61 = vmul.f32 %v2329_v14, %v867_v56  ;;  %v853_v36 = vmul.f32 1.0614054, %v2348_v0 }
 0x265   : > { %1587 = vmatmul.mubr.f32.vlgmr.msra.gmra.mxu1 %v1165_v18  ;;  %v943_v37 = vmul.f32 %v2297_v52, %v927_v5  ;;  %v929_v7 = vadd.f32 -0.28449672, %v913_v30  ;;  %vm1087_vm10 = vcmp.lt.f32.partialorder %v2172_v8, 0.0  ;;  %1733 = vpow2.f32 %v2315_v41 }
 0x266   : > { %1589 = vmatprep.mubr.f32.mxu1 %v1166_v39  ;;  %v930_v35 = vadd.f32 -0.28449672, %v914_v43  ;;  %v944_v24 = vmul.f32 %v2327_v25, %v928_v59  ;;  %v899_v1 = vadd.f32 1.4214138, %v883_v61  ;;  %v869_v55 = vadd.f32 -1.4531521, %v853_v36 }
 0x267   : > { %v959_v4 = vadd.f32 0.2548296, %v943_v37  ;;  %v945_v27 = vmul.f32 %v2313_v33, %v929_v7  ;;  %v884_v9 = vmul.f32 %v2371_v13, %v868_v23  ;;  %1735 = vpow2.f32 %v2310_v34  ;;  %v2584_v36 = vld [vmem:[#allocation13_spill] sm:$0xff] }
 0x268   : > { %v946_v17 = vmul.f32 %v2343_v44, %v930_v35  ;;  %v960_v49 = vadd.f32 0.2548296, %v944_v24  ;;  %v915_v11 = vmul.f32 %v2329_v14, %v899_v1  ;;  %v885_v48 = vmul.f32 %v2348_v0, %v869_v55 }
 0x269   : > { %v975_v40 = vmul.f32 %v2297_v52, %v959_v4  ;;  %v961_v57 = vadd.f32 0.2548296, %v945_v27  ;;  %v900_v58 = vadd.f32 1.4214138, %v884_v9  ;;  %vm1089_vm11 = vcmp.lt.f32.partialorder %v2201_v53, 0.0  ;;  %v2585_v27 = vld [vmem:[#allocation2_spill] sm:$0xff] }
 0x26a   : > { %v962_v54 = vadd.f32 0.2548296, %v946_v17  ;;  %v976_v21 = vmul.f32 %v2327_v25, %v960_v49  ;;  %v931_v15 = vadd.f32 -0.28449672, %v915_v11  ;;  %v901_v50 = vadd.f32 1.4214138, %v885_v48 }
 0x26b   : > { %v1055_v41 = vmul.f32 %v2299_v29, %v975_v40  ;;  %v1136_v52 = vmul.f32 0.5, %v2578_v28  ;;  %v977_v19 = vmul.f32 %v2313_v33, %v961_v57  ;;  %v916_v32 = vmul.f32 %v2371_v13, %v900_v58  ;;  %v2580_v29 = vld [vmem:[#allocation5_spill] sm:$0xff]  ;;  %v2581_v25 = vld [vmem:[#allocation14_spill] sm:$0xff] }
 0x26c   : > { %v978_v10 = vmul.f32 %v2343_v44, %v962_v54  ;;  %v1056_v2 = vmul.f32 %v2579_v42, %v976_v21  ;;  %v947_v63 = vmul.f32 %v2329_v14, %v931_v15  ;;  %v917_v3 = vmul.f32 %v2348_v0, %v901_v50  ;;  %v2586_v54 = vld [vmem:[#allocation6_spill] sm:$0xff]  ;;  %v2587_v15 = vld [vmem:[#allocation4_spill] sm:$0xff]  ;;  %v2590_v42 = vld [vmem:[#allocation11_spill] sm:$0xff] }
 0x26d   : > { %v1071_v34 = vsub.f32 1.0, %v1055_v41  ;;  %vm1088_vm12 = vcmp.lt.f32.partialorder %v2580_v29, 0.0  ;;  %v1057_v47 = vmul.f32 %v2581_v25, %v977_v19  ;;  %v932_v62 = vadd.f32 -0.28449672, %v916_v32  ;;  %v2588_v19 = vld [vmem:[#allocation12_spill] sm:$0xff]  ;;  %v2589_v32 = vld [vmem:[#allocation10_spill] sm:$0xff] }
 0x26e   : > { %v1058_v16 = vmul.f32 %v2360_v20, %v978_v10  ;;  %v1072_v26 = vsub.f32 1.0, %v1056_v2  ;;  %v963_v44 = vadd.f32 0.2548296, %v947_v63  ;;  %v933_v46 = vadd.f32 -0.28449672, %v917_v3  ;;  %v2591_v29 = vld [vmem:[#allocation8_spill] sm:$0xff] }
 0x26f   : > { %v1103_v33 = vsub.f32 0.0, %v1071_v34  ;;  %v1138_v45 = vmul.f32 0.5, %v2582_v6  ;;  %v1073_v38 = vsub.f32 1.0, %v1057_v47  ;;  %v948_v60 = vmul.f32 %v2371_v13, %v932_v62 }
 0x270   : > { %v1074_v12 = vsub.f32 1.0, %v1058_v16  ;;  %v1104_v5 = vsub.f32 0.0, %v1072_v26  ;;  %v979_v22 = vmul.f32 %v2329_v14, %v963_v44  ;;  %v949_v20 = vmul.f32 %v2348_v0, %v933_v46  ;;  %v1737_v46 = vld [vmem:[%s1817_s30 + $0x8] sm:$0xff] }
 0x271   : > { %v1119_v18 = vsel %vm1087_vm10, %v1103_v33, %v1071_v34  ;;  %v1105_v39 = vsub.f32 0.0, %v1073_v38  ;;  %v964_v43 = vadd.f32 0.2548296, %v948_v60  ;;  %vm1090_vm13 = vcmp.lt.f32.partialorder %v2583_v31, 0.0 }
 0x272   : > { %v1151_v56 = vadd.f32 1.0, %v1119_v18  ;;  %v1106_v30 = vsub.f32 0.0, %v1074_v12  ;;  %v1120_v37 = vsel %vm1088_vm12, %v1104_v5, %v1072_v26  ;;  %v1059_v59 = vmul.f32 %v1732_v51, %v979_v22  ;;  %v1734_v23 = vpop.eup %1733  ;;  %v2468_v51 = vld [vmem:[%s2550_s6] ss:$0 sm:$0xff]  ;;  %v1739_v22 = vld [vmem:[%s1817_s30 + $0x18] sm:$0xff] }
 0x273   : > { %v965_v61 = vadd.f32 0.2548296, %v949_v20  ;;  %v1152_v8 = vadd.f32 1.0, %v1120_v37  ;;  %v1121_v35 = vsel %vm1089_vm11, %v1105_v39, %v1073_v38  ;;  %v980_v55 = vmul.f32 %v2371_v13, %v964_v43 }
 0x274   : > { %v1167_v7 = vmul.f32 %v1151_v56, %v2584_v36  ;;  %v1122_v14 = vsel %vm1090_vm13, %v1106_v30, %v1074_v12  ;;  %v1153_v4 = vadd.f32 1.0, %v1121_v35  ;;  %v1075_v1 = vsub.f32 1.0, %v1059_v59  ;;  %v1736_v49 = vpop.eup %1735  ;;  %v1738_v12 = vld [vmem:[%s1817_s30] sm:$0xff]  ;;  %v1740_v30 = vld [vmem:[%s1817_s30 + $0x10] sm:$0xff]  ;;  %v1741_v59 = vld [vmem:[%s1817_s30 + $0x28] sm:$0xff] }
 0x275   : > { %v1154_v24 = vadd.f32 1.0, %v1122_v14  ;;  %v1137_v17 = vmul.f32 0.5, %v2585_v27  ;;  %v1168_v9 = vmul.f32 %v1152_v8, %v1136_v52  ;;  %v981_v40 = vmul.f32 %v2348_v0, %v965_v61 }
 0x276   : > { %1590 = vmatmul.mubr.f32.gmra.mxu1 %v1167_v7  ;;  %v1107_v48 = vsub.f32 0.0, %v1075_v1  ;;  %v1060_v57 = vmul.f32 %v1734_v23, %v980_v55  ;;  %vm1091_vm14 = vcmp.lt.f32.partialorder %v2586_v54, 0.0  ;;  %v1139_v50 = vmul.f32 0.5, %v2587_v15  ;;  %v1742_v7 = vld [vmem:[%s1817_s30 + $0x20] sm:$0xff]  ;;  %v1744_v55 = vld [vmem:[%s1817_s30 + $0x30] sm:$0xff] }
 0x277   : > { %v1170_v11 = vmul.f32 %v1154_v24, %v1138_v45  ;;  %1592 = vmatprep.mubr.f32.mxu1 %v1168_v9  ;;  %v1169_v53 = vmul.f32 %v1153_v4, %v1137_v17  ;;  %v1061_v58 = vmul.f32 %v1736_v49, %v981_v40  ;;  %vm1092_vm15 = vcmp.lt.f32.partialorder %v2588_v19, 0.0  ;;  %v1743_v4 = vld [vmem:[%s1817_s30 + $0x38] sm:$0xff]  ;;  %v1745_v49 = vld [vmem:[%s1817_s30 + $0x48] sm:$0xff]  ;;  %v1746_v54 = vld [vmem:[%s1817_s30 + $0x40] sm:$0xff] }
 0x278   : > { %v1123_v41 = vsel %vm1091_vm14, %v1107_v48, %v1075_v1  ;;  %v1076_v21 = vsub.f32 1.0, %v1060_v57  ;;  %vm1093_vm1 = vcmp.lt.f32.partialorder %v2589_v32, 0.0  ;;  %v1140_v2 = vmul.f32 0.5, %v2590_v42  ;;  %v1750_v42 = vld [vmem:[%s1817_s30 + $0x60] sm:$0xff] }
 0x279   : > { %v1155_v13 = vadd.f32 1.0, %v1123_v41  ;;  %v1077_v28 = vsub.f32 1.0, %v1061_v58  ;;  %v1141_v25 = vmul.f32 0.5, %v2591_v29 }
 0x27a   : > { %1593 = vmatmul.mubr.f32.gmra.mxu1 %v1169_v53  ;;  %v1108_v52 = vsub.f32 0.0, %v1076_v21 }
 0x27b   : > { %1595 = vmatprep.mubr.f32.mxu1 %v1170_v11  ;;  %v1171_v0 = vmul.f32 %v1155_v13, %v1139_v50  ;;  %v1109_v10 = vsub.f32 0.0, %v1077_v28 }
 0x27c   : > { %v1124_v34 = vsel %vm1092_vm15, %v1108_v52, %v1076_v21  ;;  %v1747_v21 = vld [vmem:[%s1817_s30 + $0x58] sm:$0xff] }
 0x27d   : > { %v1156_v63 = vadd.f32 1.0, %v1124_v34  ;;  %v1125_v3 = vsel %vm1093_vm1, %v1109_v10, %v1077_v28  ;;  %v1748_v28 = vld [vmem:[%s1817_s30 + $0x50] sm:$0xff]  ;;  %v1749_v10 = vld [vmem:[%s1817_s30 + $0x68] sm:$0xff] }
 0x27e   : > { %1596 = vmatmul.mubr.f32.gmra.mxu1 %v1171_v0  ;;  %v1157_v47 = vadd.f32 1.0, %v1125_v3 }
 0x27f   : > { %v1172_v16 = vmul.f32 %v1156_v63, %v1140_v2 }
 0x280   : > { %v1173_v62 = vmul.f32 %v1157_v47, %v1141_v25  ;;  %v1751_v25 = vld [vmem:[%s1817_s30 + $0x78] sm:$0xff] }
 0x281   : > { %1598 = vmatprep.mubr.f32.mxu1 %v1172_v16 }
 0x282   : > { %1599 = vmatmul.mubr.f32.gmra.mxu1 %v1173_v62  ;;  %v1752_v62 = vld [vmem:[%s1817_s30 + $0x70] sm:$0xff] }
 0x316   : > { %v1579_v33 = vpop.f32.mrf.mxu0 }
 0x317   : > { %v1269_v26 = vadd.f32 %v1579_v33, %v2468_v51 }
 0x318   : > { %v1263_v44 = vpop.f32.mrf.mxu0 }
 0x319   : > { %v1343_v6 = vadd.f32 %v1737_v46, %v1269_v26  ;;  %v1264_v45 = vadd.f32 %v2468_v51, %v1263_v44 }
 0x31b   : > { %v1582_v38 = vpop.f32.mrf.mxu0  ;;  %1359 = vst.msk [vmem:[%s2476_s20 + $0x8] sm:$0xff] %vm298_vm0, %v1343_v6  ;;  %v1342_v60 = vadd.f32 %v1738_v12, %v1264_v45 }
 0x31c   : > { %v1279_v18 = vadd.f32 %v1582_v38, %v2468_v51 }
 0x31d   : > { %v1273_v5 = vpop.f32.mrf.mxu0  ;;  %1358 = vst.msk [vmem:[%s2476_s20] sm:$0xff] %vm298_vm0, %v1342_v60 }
 0x31e   : > { %v1345_v20 = vadd.f32 %v1739_v22, %v1279_v18  ;;  %v1274_v56 = vadd.f32 %v2468_v51, %v1273_v5 }
 0x31f   : > { %v1585_v39 = vpop.f32.mrf.mxu0 }
 0x320   : > { %1361 = vst.msk [vmem:[%s2476_s20 + $0x18] sm:$0xff] %vm298_vm0, %v1345_v20  ;;  %v1344_v43 = vadd.f32 %v1740_v30, %v1274_v56  ;;  %v1289_v31 = vadd.f32 %v1585_v39, %v2468_v51 }
 0x321   : > { %v1283_v37 = vpop.f32.mrf.mxu0 }
 0x322   : > { %1360 = vst.msk [vmem:[%s2476_s20 + $0x10] sm:$0xff] %vm298_vm0, %v1344_v43  ;;  %v1347_v61 = vadd.f32 %v1741_v59, %v1289_v31  ;;  %v1284_v36 = vadd.f32 %v2468_v51, %v1283_v37 }
 0x324   : > { %1363 = vst.msk [vmem:[%s2476_s20 + $0x28] sm:$0xff] %vm298_vm0, %v1347_v61  ;;  %v1346_v8 = vadd.f32 %v1742_v7, %v1284_v36 }
 0x325   : > { %v1588_v35 = vpop.f32.mrf.mxu1 }
 0x326   : > { %v1299_v14 = vadd.f32 %v1588_v35, %v2468_v51  ;;  %1362 = vst.msk [vmem:[%s2476_s20 + $0x20] sm:$0xff] %vm298_vm0, %v1346_v8 }
 0x327   : > { %v1293_v23 = vpop.f32.mrf.mxu1 }
 0x328   : > { %v1349_v24 = vadd.f32 %v1743_v4, %v1299_v14  ;;  %v1294_v1 = vadd.f32 %v2468_v51, %v1293_v23 }
 0x32a   : > { %1365 = vst.msk [vmem:[%s2476_s20 + $0x38] sm:$0xff] %vm298_vm0, %v1349_v24  ;;  %v1348_v27 = vadd.f32 %v1744_v55, %v1294_v1 }
 0x32c   : > { %1364 = vst.msk [vmem:[%s2476_s20 + $0x30] sm:$0xff] %vm298_vm0, %v1348_v27 }
 0x336   : > { %v1591_v17 = vpop.f32.mrf.mxu1 }
 0x337   : > { %v1309_v9 = vadd.f32 %v1591_v17, %v2468_v51 }
 0x338   : > { %v1303_v40 = vpop.f32.mrf.mxu1 }
 0x339   : > { %v1351_v11 = vadd.f32 %v1745_v49, %v1309_v9  ;;  %v1304_v48 = vadd.f32 %v2468_v51, %v1303_v40 }
 0x33a   : > { %v1594_v57 = vpop.f32.mrf.mxu1 }
 0x33b   : > { %1367 = vst.msk [vmem:[%s2476_s20 + $0x48] sm:$0xff] %vm298_vm0, %v1351_v11  ;;  %v1350_v53 = vadd.f32 %v1746_v54, %v1304_v48  ;;  %v1319_v58 = vadd.f32 %v1594_v57, %v2468_v51 }
 0x33c   : > { %v1313_v41 = vpop.f32.mrf.mxu1 }
 0x33d   : > { %1366 = vst.msk [vmem:[%s2476_s20 + $0x40] sm:$0xff] %vm298_vm0, %v1350_v53  ;;  %v1353_v15 = vadd.f32 %v1747_v21, %v1319_v58  ;;  %v1314_v50 = vadd.f32 %v2468_v51, %v1313_v41 }
 0x33e   : > { %v1597_v13 = vpop.f32.mrf.mxu1 }
 0x33f   : > { %1369 = vst.msk [vmem:[%s2476_s20 + $0x58] sm:$0xff] %vm298_vm0, %v1353_v15  ;;  %v1352_v52 = vadd.f32 %v1748_v28, %v1314_v50  ;;  %v1329_v19 = vadd.f32 %v1597_v13, %v2468_v51 }
 0x340   : > { %v1323_v0 = vpop.f32.mrf.mxu1 }
 0x341   : > { %1368 = vst.msk [vmem:[%s2476_s20 + $0x50] sm:$0xff] %vm298_vm0, %v1352_v52  ;;  %v1355_v32 = vadd.f32 %v1749_v10, %v1329_v19  ;;  %v1324_v34 = vadd.f32 %v2468_v51, %v1323_v0 }
 0x342   : > { %v1600_v63 = vpop.f32.mrf.mxu1 }
 0x343   : > { %1371 = vst.msk [vmem:[%s2476_s20 + $0x68] sm:$0xff] %vm298_vm0, %v1355_v32  ;;  %v1354_v2 = vadd.f32 %v1750_v42, %v1324_v34  ;;  %v1339_v3 = vadd.f32 %v1600_v63, %v2468_v51 }
 0x344   : > { %v1333_v29 = vpop.f32.mrf.mxu1 }
 0x345   : > { %1370 = vst.msk [vmem:[%s2476_s20 + $0x60] sm:$0xff] %vm298_vm0, %v1354_v2  ;;  %v1357_v47 = vadd.f32 %v1751_v25, %v1339_v3  ;;  %v1334_v16 = vadd.f32 %v2468_v51, %v1333_v29 }
 0x347   : > { %1373 = vst.msk [vmem:[%s2476_s20 + $0x78] sm:$0xff] %vm298_vm0, %v1357_v47  ;;  %v1356_v33 = vadd.f32 %v1752_v62, %v1334_v16 }
 0x349   : > { %1372 = vst.msk [vmem:[%s2476_s20 + $0x70] sm:$0xff] %vm298_vm0, %v1356_v33 }
 0x34a PF: > { %s17_s24 = sadd.s32 1, %s1759_s24  }
 0x34b   : > { %p14_p4 = scmp.ge.s32.totalorder %s17_s24, 4  }
 0x34d   :  { %16 = sbr.rel (!%p14_p4) target bundleno = 1 (0x1), region = 78 }

</bundles_post_ra>
